<compile_context>
chip_gen: v7x
topology: tpu7x:2x2x1
jax: 0.10.0
libtpu: 0.0.40
codegen_flags: <defaults>
</compile_context>

<pallas_src>
import functools

import jax
import jax.numpy as jnp
from jax import lax
from jax.experimental import pallas as pl
from jax.experimental.pallas import tpu as pltpu


def _weightnet_dw_kernel(x_ref, k_ref, o_ref, xs_ref, *,
                         ksize, stride, pad, ho, wo):
    """One (sample, channel-tile) block of the dynamic depthwise conv.

    x_ref : (1, H, W, Ct)      unpadded activations, channels-last
    k_ref : (1, k*k, Ct)       per-sample depthwise kernel (already a * w2)
    o_ref : (1, ho, wo, Ct)    output block
    xs_ref: (Hp, Wp, Ct) VMEM  scratch holding the zero-padded activations
    """
    H = x_ref.shape[1]
    W = x_ref.shape[2]
    Ct = x_ref.shape[3]

    # In-kernel zero padding: zero the halo'd scratch, then copy the block
    # into its interior.  (Avoids materializing a padded copy of x in HBM.)
    xs_ref[...] = jnp.zeros_like(xs_ref)
    xs_ref[pl.ds(pad, H), pl.ds(pad, W), :] = x_ref[0]

    xs = xs_ref[...]                               # (Hp, Wp, Ct), input dtype
    kern = k_ref[0].astype(jnp.float32)            # (k*k, Ct)

    # k*k shifted-window MACs; channels sit on the lane axis so each tap is a
    # per-lane broadcast multiply-accumulate.  Offsets / strides only touch
    # the leading (H) and sublane (W) axes.
    acc = jnp.zeros((ho, wo, Ct), jnp.float32)
    for i in range(ksize):                         # static k*k tap unroll
        for j in range(ksize):
            patch = lax.slice(
                xs,
                (i, j, 0),
                (i + stride * (ho - 1) + 1, j + stride * (wo - 1) + 1, Ct),
                (stride, stride, 1))               # (ho, wo, Ct)
            ktap = kern[i * ksize + j][None, None, :]          # (1, 1, Ct)
            acc = acc + patch.astype(jnp.float32) * ktap
    o_ref[0] = acc.astype(o_ref.dtype)


def _weightnet_dw_nhwc(x_nhwc, kern, *, ksize, stride):
    """x_nhwc: (B, H, W, C) channels-last activations; kern: (B, k*k, C)."""
    B, H, W, C = x_nhwc.shape
    pad = ksize // 2
    ho = (H + 2 * pad - ksize) // stride + 1
    wo = (W + 2 * pad - ksize) // stride + 1
    hp, wp = H + 2 * pad, W + 2 * pad

    # Channel tile: a 128-lane tile when C allows it, else the full (small) C.
    ct = 128 if (C % 128 == 0) else C
    nct = C // ct

    kernel = functools.partial(_weightnet_dw_kernel, ksize=ksize,
                               stride=stride, pad=pad, ho=ho, wo=wo)

    return pl.pallas_call(
        kernel,
        out_shape=jax.ShapeDtypeStruct((B, ho, wo, C), x_nhwc.dtype),
        grid_spec=pltpu.PrefetchScalarGridSpec(
            num_scalar_prefetch=0,
            grid=(B, nct),
            in_specs=[
                pl.BlockSpec((1, H, W, ct), lambda b, c: (b, 0, 0, c)),
                pl.BlockSpec((1, ksize * ksize, ct), lambda b, c: (b, 0, c)),
            ],
            out_specs=pl.BlockSpec((1, ho, wo, ct), lambda b, c: (b, 0, 0, c)),
            scratch_shapes=[pltpu.VMEM((hp, wp, ct), x_nhwc.dtype)],
        ),
        compiler_params=pltpu.CompilerParams(
            dimension_semantics=("parallel", "parallel"),
            vmem_limit_bytes=32 * 1024 * 1024,
        ),
    )(x_nhwc, kern)


def weightnet_dw(x, x_gap, w1, b1, w2, *, ksize, stride):
    """NCHW front-end matching the PyTorch module.

    x     : (B, inp, H, W)
    x_gap : (B, inp_gap, 1, 1)
    w1    : (inp, inp_gap, 1, 1)   wn_fc1.weight
    b1    : (inp,)                 wn_fc1.bias
    w2    : (inp*k*k, 1, 1, 1)     wn_fc2.weight (grouped 1x1, groups=inp)
    """
    B, C, H, W = x.shape
    inp_gap = x_gap.shape[1]

    # Hoisted weight generation: a = sigmoid(wn_fc1(x_gap)); kern = a * w2.
    # One tiny batched matmul + outer product in plain JAX (negligible FLOPs).
    a = jax.nn.sigmoid(
        x_gap.reshape(B, inp_gap) @ w1.reshape(C, inp_gap).T
        + b1.reshape(1, C))                                     # (B, C)
    kern = a[:, None, :] * w2.reshape(C, ksize * ksize).T[None, :, :]  # (B,k*k,C)

    # Layout plumbing only: run the depthwise conv channels-last.
    x_nhwc = jnp.transpose(x, (0, 2, 3, 1))
    y_nhwc = _weightnet_dw_nhwc(x_nhwc, kern, ksize=ksize, stride=stride)
    return jnp.transpose(y_nhwc, (0, 3, 1, 2))


def _reference(x, x_gap, w1, b1, w2, *, ksize, stride):
    """Pure-JAX mirror of the PyTorch forward (for verification)."""
    B, C, H, W = x.shape
    pad = ksize // 2
    inp_gap = x_gap.shape[1]
    a = jax.nn.sigmoid(
        x_gap.reshape(B, inp_gap) @ w1.reshape(C, inp_gap).T + b1)   # (B, C)
    x_w = a[:, :, None] * w2.reshape(C, ksize * ksize)               # (B,C,k*k)
    x_w = x_w.reshape(B * C, 1, ksize, ksize)
    lhs = x.reshape(1, B * C, H, W)
    out = lax.conv_general_dilated(
        lhs, x_w, window_strides=(stride, stride),
        padding=[(pad, pad), (pad, pad)],
        feature_group_count=B * C,
        dimension_numbers=("NCHW", "OIHW", "NCHW"))
    return out.reshape(B, C, out.shape[2], out.shape[3])


if __name__ == "__main__":
    B, inp, H, W = 2, 4, 16, 16
    ksize, stride = 3, 1
    inp_gap = max(16, inp // 16)

    key = jax.random.PRNGKey(0)
    k1, k2, k3, k4, k5 = jax.random.split(key, 5)
    x = jax.random.normal(k1, (B, inp, H, W), jnp.float32)
    x_gap = jax.random.normal(k2, (B, inp_gap, 1, 1), jnp.float32)
    # deterministic synthetic parameters (shapes follow nn.Conv2d in __init__)
    w1 = 0.1 * jax.random.normal(k3, (inp, inp_gap, 1, 1), jnp.float32)  # wn_fc1.weight
    b1 = 0.1 * jax.random.normal(k4, (inp,), jnp.float32)                # wn_fc1.bias
    w2 = 0.1 * jax.random.normal(k5, (inp * ksize * ksize, 1, 1, 1),
                                 jnp.float32)                            # wn_fc2.weight

    out = weightnet_dw(x, x_gap, w1, b1, w2, ksize=ksize, stride=stride)
    out = jax.block_until_ready(out)

    ref = _reference(x, x_gap, w1, b1, w2, ksize=ksize, stride=stride)
    assert out.shape == ref.shape, (out.shape, ref.shape)
    assert jnp.allclose(out, ref, atol=1e-4, rtol=1e-4), "mismatch vs reference"

    print("KERNEL_OK")
</pallas_src>

<mosaic_0001>
module attributes {stable_mosaic.version = 11 : i64} {
  func.func @_weightnet_dw_kernel(%arg0: i32, %arg1: i32, %arg2: memref<1x16x16x4xf32, #tpu.memory_space<vmem>>, %arg3: memref<1x9x4xf32, #tpu.memory_space<vmem>>, %arg4: memref<1x16x16x4xf32, #tpu.memory_space<vmem>>, %arg5: memref<18x18x4xf32, #tpu.memory_space<vmem>>) attributes {dimension_semantics = [#tpu.dimension_semantics<parallel>, #tpu.dimension_semantics<parallel>], iteration_bounds = array<i64: 2, 1>, scalar_prefetch = 0 : i64, scratch_operands = 1 : i64, tpu.core_type = #tpu.core_type<tc>, window_params = [{transform_indices = @transform_0, window_bounds = array<i64: 1, 16, 16, 4>}, {transform_indices = @transform_1, window_bounds = array<i64: 1, 9, 4>}, {transform_indices = @transform_2, window_bounds = array<i64: 1, 16, 16, 4>}]} {
    %cst = arith.constant 0.000000e+00 : f32
    %0 = vector.broadcast %cst : f32 to vector<18x18x4xf32>
    %c0 = arith.constant 0 : index
    %c0_0 = arith.constant 0 : index
    %c0_1 = arith.constant 0 : index
    %1 = vector.load %arg5[%c0, %c0_0, %c0_1] : memref<18x18x4xf32, #tpu.memory_space<vmem>>, vector<18x18x4xf32>
    tpu.vector_store %arg5[%c0, %c0_0, %c0_1], %0 {strides = array<i32>} : memref<18x18x4xf32, #tpu.memory_space<vmem>>, vector<18x18x4xf32>,
    %c0_2 = arith.constant 0 : index
    %c0_3 = arith.constant 0 : index
    %c0_4 = arith.constant 0 : index
    %c0_5 = arith.constant 0 : index
    %2 = vector.load %arg2[%c0_2, %c0_3, %c0_4, %c0_5] : memref<1x16x16x4xf32, #tpu.memory_space<vmem>>, vector<1x16x16x4xf32>
    %3 = vector.shape_cast %2 : vector<1x16x16x4xf32> to vector<16x16x4xf32>
    %c1 = arith.constant 1 : index
    %c1_6 = arith.constant 1 : index
    %c0_7 = arith.constant 0 : index
    %4 = vector.load %arg5[%c1, %c1_6, %c0_7] : memref<18x18x4xf32, #tpu.memory_space<vmem>>, vector<16x16x4xf32>
    tpu.vector_store %arg5[%c1, %c1_6, %c0_7], %3 {strides = array<i32>} : memref<18x18x4xf32, #tpu.memory_space<vmem>>, vector<16x16x4xf32>,
    %c0_8 = arith.constant 0 : index
    %c0_9 = arith.constant 0 : index
    %c0_10 = arith.constant 0 : index
    %5 = vector.load %arg5[%c0_8, %c0_9, %c0_10] : memref<18x18x4xf32, #tpu.memory_space<vmem>>, vector<18x18x4xf32>
    %c0_11 = arith.constant 0 : index
    %c0_12 = arith.constant 0 : index
    %c0_13 = arith.constant 0 : index
    %6 = vector.load %arg3[%c0_11, %c0_12, %c0_13] : memref<1x9x4xf32, #tpu.memory_space<vmem>>, vector<1x9x4xf32>
    %7 = vector.shape_cast %6 : vector<1x9x4xf32> to vector<9x4xf32>
    %cst_14 = arith.constant 0.000000e+00 : f32
    %8 = vector.broadcast %cst_14 : f32 to vector<16x16x4xf32>
    %9 = vector.extract_strided_slice %5 {offsets = [0, 0, 0], sizes = [16, 16, 4], strides = [1, 1, 1]} : vector<18x18x4xf32> to vector<16x16x4xf32>
    %10 = vector.extract_strided_slice %7 {offsets = [0, 0], sizes = [1, 4], strides = [1, 1]} : vector<9x4xf32> to vector<1x4xf32>
    %11 = vector.shape_cast %10 : vector<1x4xf32> to vector<4xf32>
    %12 = vector.shape_cast %11 : vector<4xf32> to vector<1x1x4xf32>
    %13 = vector.broadcast %12 : vector<1x1x4xf32> to vector<16x16x4xf32>
    %14 = arith.mulf %9, %13 : vector<16x16x4xf32>
    %15 = arith.addf %8, %14 : vector<16x16x4xf32>
    %16 = vector.extract_strided_slice %5 {offsets = [0, 1, 0], sizes = [16, 16, 4], strides = [1, 1, 1]} : vector<18x18x4xf32> to vector<16x16x4xf32>
    %17 = vector.extract_strided_slice %7 {offsets = [1, 0], sizes = [1, 4], strides = [1, 1]} : vector<9x4xf32> to vector<1x4xf32>
    %18 = vector.shape_cast %17 : vector<1x4xf32> to vector<4xf32>
    %19 = vector.shape_cast %18 : vector<4xf32> to vector<1x1x4xf32>
    %20 = vector.broadcast %19 : vector<1x1x4xf32> to vector<16x16x4xf32>
    %21 = arith.mulf %16, %20 : vector<16x16x4xf32>
    %22 = arith.addf %15, %21 : vector<16x16x4xf32>
    %23 = vector.extract_strided_slice %5 {offsets = [0, 2, 0], sizes = [16, 16, 4], strides = [1, 1, 1]} : vector<18x18x4xf32> to vector<16x16x4xf32>
    %24 = vector.extract_strided_slice %7 {offsets = [2, 0], sizes = [1, 4], strides = [1, 1]} : vector<9x4xf32> to vector<1x4xf32>
    %25 = vector.shape_cast %24 : vector<1x4xf32> to vector<4xf32>
    %26 = vector.shape_cast %25 : vector<4xf32> to vector<1x1x4xf32>
    %27 = vector.broadcast %26 : vector<1x1x4xf32> to vector<16x16x4xf32>
    %28 = arith.mulf %23, %27 : vector<16x16x4xf32>
    %29 = arith.addf %22, %28 : vector<16x16x4xf32>
    %30 = vector.extract_strided_slice %5 {offsets = [1, 0, 0], sizes = [16, 16, 4], strides = [1, 1, 1]} : vector<18x18x4xf32> to vector<16x16x4xf32>
    %31 = vector.extract_strided_slice %7 {offsets = [3, 0], sizes = [1, 4], strides = [1, 1]} : vector<9x4xf32> to vector<1x4xf32>
    %32 = vector.shape_cast %31 : vector<1x4xf32> to vector<4xf32>
    %33 = vector.shape_cast %32 : vector<4xf32> to vector<1x1x4xf32>
    %34 = vector.broadcast %33 : vector<1x1x4xf32> to vector<16x16x4xf32>
    %35 = arith.mulf %30, %34 : vector<16x16x4xf32>
    %36 = arith.addf %29, %35 : vector<16x16x4xf32>
    %37 = vector.extract_strided_slice %5 {offsets = [1, 1, 0], sizes = [16, 16, 4], strides = [1, 1, 1]} : vector<18x18x4xf32> to vector<16x16x4xf32>
    %38 = vector.extract_strided_slice %7 {offsets = [4, 0], sizes = [1, 4], strides = [1, 1]} : vector<9x4xf32> to vector<1x4xf32>
    %39 = vector.shape_cast %38 : vector<1x4xf32> to vector<4xf32>
    %40 = vector.shape_cast %39 : vector<4xf32> to vector<1x1x4xf32>
    %41 = vector.broadcast %40 : vector<1x1x4xf32> to vector<16x16x4xf32>
    %42 = arith.mulf %37, %41 : vector<16x16x4xf32>
    %43 = arith.addf %36, %42 : vector<16x16x4xf32>
    %44 = vector.extract_strided_slice %5 {offsets = [1, 2, 0], sizes = [16, 16, 4], strides = [1, 1, 1]} : vector<18x18x4xf32> to vector<16x16x4xf32>
    %45 = vector.extract_strided_slice %7 {offsets = [5, 0], sizes = [1, 4], strides = [1, 1]} : vector<9x4xf32> to vector<1x4xf32>
    %46 = vector.shape_cast %45 : vector<1x4xf32> to vector<4xf32>
    %47 = vector.shape_cast %46 : vector<4xf32> to vector<1x1x4xf32>
    %48 = vector.broadcast %47 : vector<1x1x4xf32> to vector<16x16x4xf32>
    %49 = arith.mulf %44, %48 : vector<16x16x4xf32>
    %50 = arith.addf %43, %49 : vector<16x16x4xf32>
    %51 = vector.extract_strided_slice %5 {offsets = [2, 0, 0], sizes = [16, 16, 4], strides = [1, 1, 1]} : vector<18x18x4xf32> to vector<16x16x4xf32>
    %52 = vector.extract_strided_slice %7 {offsets = [6, 0], sizes = [1, 4], strides = [1, 1]} : vector<9x4xf32> to vector<1x4xf32>
    %53 = vector.shape_cast %52 : vector<1x4xf32> to vector<4xf32>
    %54 = vector.shape_cast %53 : vector<4xf32> to vector<1x1x4xf32>
    %55 = vector.broadcast %54 : vector<1x1x4xf32> to vector<16x16x4xf32>
    %56 = arith.mulf %51, %55 : vector<16x16x4xf32>
    %57 = arith.addf %50, %56 : vector<16x16x4xf32>
    %58 = vector.extract_strided_slice %5 {offsets = [2, 1, 0], sizes = [16, 16, 4], strides = [1, 1, 1]} : vector<18x18x4xf32> to vector<16x16x4xf32>
    %59 = vector.extract_strided_slice %7 {offsets = [7, 0], sizes = [1, 4], strides = [1, 1]} : vector<9x4xf32> to vector<1x4xf32>
    %60 = vector.shape_cast %59 : vector<1x4xf32> to vector<4xf32>
    %61 = vector.shape_cast %60 : vector<4xf32> to vector<1x1x4xf32>
    %62 = vector.broadcast %61 : vector<1x1x4xf32> to vector<16x16x4xf32>
    %63 = arith.mulf %58, %62 : vector<16x16x4xf32>
    %64 = arith.addf %57, %63 : vector<16x16x4xf32>
    %65 = vector.extract_strided_slice %5 {offsets = [2, 2, 0], sizes = [16, 16, 4], strides = [1, 1, 1]} : vector<18x18x4xf32> to vector<16x16x4xf32>
    %66 = vector.extract_strided_slice %7 {offsets = [8, 0], sizes = [1, 4], strides = [1, 1]} : vector<9x4xf32> to vector<1x4xf32>
    %67 = vector.shape_cast %66 : vector<1x4xf32> to vector<4xf32>
    %68 = vector.shape_cast %67 : vector<4xf32> to vector<1x1x4xf32>
    %69 = vector.broadcast %68 : vector<1x1x4xf32> to vector<16x16x4xf32>
    %70 = arith.mulf %65, %69 : vector<16x16x4xf32>
    %71 = arith.addf %64, %70 : vector<16x16x4xf32>
    %c0_15 = arith.constant 0 : index
    %c0_16 = arith.constant 0 : index
    %c0_17 = arith.constant 0 : index
    %c0_18 = arith.constant 0 : index
    %72 = vector.load %arg4[%c0_15, %c0_16, %c0_17, %c0_18] : memref<1x16x16x4xf32, #tpu.memory_space<vmem>>, vector<1x16x16x4xf32>
    %73 = vector.shape_cast %72 : vector<1x16x16x4xf32> to vector<16x16x4xf32>
    %74 = vector.shape_cast %71 : vector<16x16x4xf32> to vector<1x16x16x4xf32>
    tpu.vector_store %arg4[%c0_15, %c0_16, %c0_17, %c0_18], %74 {strides = array<i32>} : memref<1x16x16x4xf32, #tpu.memory_space<vmem>>, vector<1x16x16x4xf32>,
    return
  }
  func.func @transform_0(%arg0: i32, %arg1: i32) -> (i32, i32, i32, i32) {
    %c0_i32 = arith.constant 0 : i32
    %c0_i32_0 = arith.constant 0 : i32
    %c0_i32_1 = arith.constant 0 : i32
    return %arg0, %c0_i32, %c0_i32_0, %arg1 : i32, i32, i32, i32
  }
  func.func @transform_1(%arg0: i32, %arg1: i32) -> (i32, i32, i32) {
    %c0_i32 = arith.constant 0 : i32
    %c0_i32_0 = arith.constant 0 : i32
    return %arg0, %c0_i32, %arg1 : i32, i32, i32
  }
  func.func @transform_2(%arg0: i32, %arg1: i32) -> (i32, i32, i32, i32) {
    %c0_i32 = arith.constant 0 : i32
    %c0_i32_0 = arith.constant 0 : i32
    %c0_i32_1 = arith.constant 0 : i32
    return %arg0, %c0_i32, %c0_i32_0, %arg1 : i32, i32, i32, i32
  }
}

</mosaic_0001>

<bundles_post_ra>
// kernel: tpu_custom_call.1
= control target key start
LH: loop header
LB: loop body
LE: loop exit
PB: predicated region body
PF: predicated region fallthrough
CT: control target
= control target key end

     0   :  { %s2270_s9 = smov 0   ;;  %s2272_s10 = smov 0   ;;  %s3834_s0 = inlined_call_operand.vmem [shape: f32[2,16,16,4], index: 0, kind: input, shape index: {}]   ;;  %s3835_s1 = inlined_call_operand.vmem [shape: f32[2,9,4], index: 1, kind: input, shape index: {}]   ;;  %s3836_s2 = inlined_call_operand.vmem [shape: f32[2,16,16,4], index: 2, kind: output, shape index: {}]  }
   0x1   :  { %s2274_s11 = smov 0  }
   0x2 LB: > { %s24_s12 = sadd.s32 1, %s2248_s10  ;;  %p2190_p0 = scmp.ge.s32.totalorder %s2252_s11, 1  ;;  %s2252_s11 = sphi %s2274_s11, %s12_s11   ;;  %s2248_s10 = sphi %s2272_s10, %s3838_s10   ;;  %s2244_s9 = sphi %s2270_s9, %s3837_s9  }
   0x3   : > { %p26_p1 = scmp.ge.s32.totalorder %s24_s12, 2  ;;  %p146_p2 = scmp.lt.s32.totalorder %s2252_s11, 3 }
   0x5   : > { %s3840_s12 = smov (%p26_p1, %s24_s12), 0  ;;  %p147_p3 = pnand %p2190_p0, %p146_p2 }
   0x6   : > { %vm206_vm0 = vcmask (!%p147_p3), 31744   ;;  %vm209_vm1 = vcmask (!%p147_p3), 25600   ;;  %p182_p4 = scmp.lt.s32.totalorder (!%p147_p3), %s2244_s9, 1  ;;  %v2254_v0 = vmov (!%p147_p3), 0.0   ;;  %v383_v1 = vlaneseq (!%p147_p3) }
   0x7   : > { %150 = sbr.rel (%p147_p3) target bundleno = 331 (0x14b), region = 28  ;;  %207 = vst.msk [vmem:[#allocation2] sm:$0xff] (!%p147_p3), %vm206_vm0, %v2254_v0  ;;  %208 = vst.msk [vmem:[#allocation2 + $0x8] sm:$0xff] (!%p147_p3), %vm206_vm0, %v2254_v0  ;;  %vm551_vm2 = vcmask (!%p147_p3), 1046528   ;;  %vm796_vm3 = vcmask (!%p147_p3), 1045504  }
   0x8   : > { %211 = vst.msk [vmem:[#allocation2 + $0x18] sm:$0xff] (!%p147_p3), %vm206_vm0, %v2254_v0  ;;  %212 = vst.msk [vmem:[#allocation2 + $0x20] sm:$0xff] (!%p147_p3), %vm206_vm0, %v2254_v0  ;;  %v2365_v3 = vshrl.u32 (!%p147_p3), %v383_v1, 7 }
   0x9   : > { %214 = vst.msk [vmem:[#allocation2 + $0x30] sm:$0xff] (!%p147_p3), %vm206_vm0, %v2254_v0  ;;  %215 = vst.msk [vmem:[#allocation2 + $0x38] sm:$0xff] (!%p147_p3), %vm206_vm0, %v2254_v0 }
   0xa   : > { %217 = vst.msk [vmem:[#allocation2 + $0x48] sm:$0xff] (!%p147_p3), %vm206_vm0, %v2254_v0  ;;  %218 = vst.msk [vmem:[#allocation2 + $0x50] sm:$0xff] (!%p147_p3), %vm206_vm0, %v2254_v0  ;;  %v453_v14 = vsub.s32 (!%p147_p3), 1, %v2365_v3  ;;  %v698_v15 = vsub.s32 (!%p147_p3), 2, %v2365_v3  ;;  %v385_v19 = vsub.s32 (!%p147_p3), 0, %v2365_v3  ;;  %v1011_v20 = vsub.s32 (!%p147_p3), 4, %v2365_v3 }
   0xb   : > { %220 = vst.msk [vmem:[#allocation2 + $0x60] sm:$0xff] (!%p147_p3), %vm206_vm0, %v2254_v0  ;;  %221 = vst.msk [vmem:[#allocation2 + $0x68] sm:$0xff] (!%p147_p3), %vm206_vm0, %v2254_v0  ;;  %v1255_v24 = vsub.s32 (!%p147_p3), 5, %v2365_v3  ;;  %v943_v28 = vsub.s32 (!%p147_p3), 3, %v2365_v3  ;;  %v1567_v34 = vsub.s32 (!%p147_p3), 7, %v2365_v3  ;;  %v1499_v48 = vsub.s32 (!%p147_p3), 6, %v2365_v3 }
   0xc   : > { %223 = vst.msk [vmem:[#allocation2 + $0x78] sm:$0xff] (!%p147_p3), %vm206_vm0, %v2254_v0  ;;  %224 = vst.msk [vmem:[#allocation2 + $0x80] sm:$0xff] (!%p147_p3), %vm206_vm0, %v2254_v0 }
   0xd   : > { %226 = vst.msk [vmem:[#allocation2 + $0x90] sm:$0xff] (!%p147_p3), %vm206_vm0, %v2254_v0  ;;  %227 = vst.msk [vmem:[#allocation2 + $0x98] sm:$0xff] (!%p147_p3), %vm206_vm0, %v2254_v0 }
   0xe   : > { %229 = vst.msk [vmem:[#allocation2 + $0xa8] sm:$0xff] %vm206_vm0, %v2254_v0  ;;  %230 = vst.msk [vmem:[#allocation2 + $0xb0] sm:$0xff] %vm206_vm0, %v2254_v0  ;;  %s3842_s9 = smov (!%p182_p4, %s2244_s9), 1  ;;  %v327_v50 = vld [vmem:[#allocation2] sm:$0xff]  ;;  %v328_v51 = vld [vmem:[#allocation2 + $0x8] sm:$0xff] }
   0xf   : > { %232 = vst.msk [vmem:[#allocation2 + $0xc0] sm:$0xff] %vm206_vm0, %v2254_v0  ;;  %233 = vst.msk [vmem:[#allocation2 + $0xc8] sm:$0xff] %vm206_vm0, %v2254_v0  ;;  %s2200_s13 = sshll.u32 %s3842_s9, 8  ;;  %s2201_s14 = sshll.u32 %s3842_s9, 4 }
  0x10   : > { %235 = vst.msk [vmem:[#allocation2 + $0xd8] sm:$0xff] %vm206_vm0, %v2254_v0  ;;  %236 = vst.msk [vmem:[#allocation2 + $0xe0] sm:$0xff] %vm206_vm0, %v2254_v0  ;;  %s2357_s17 = scalar_lea.vmem %s3834_s0, %s2200_s13  ;;  %s2362_s20 = scalar_lea.vmem %s3835_s1, %s2201_s14 }
  0x11   : > { %238 = vst.msk [vmem:[#allocation2 + $0xf0] sm:$0xff] %vm206_vm0, %v2254_v0  ;;  %239 = vst.msk [vmem:[#allocation2 + $0xf8] sm:$0xff] %vm206_vm0, %v2254_v0  ;;  %v262_v2 = vld [vmem:[%s2357_s17] sm:$0xff]  ;;  %v263_v4 = vld [vmem:[%s2357_s17 + $0x8] sm:$0xff]  ;;  %s2558_s23 = scalar_lea.vmem %s3836_s2, %s2200_s13 }
  0x12   : > { %241 = vst.msk [vmem:[#allocation2 + $0x108] sm:$0xff] %vm206_vm0, %v2254_v0  ;;  %242 = vst.msk [vmem:[#allocation2 + $0x110] sm:$0xff] %vm206_vm0, %v2254_v0  ;;  %v264_v5 = vld [vmem:[%s2357_s17 + $0x10] sm:$0xff]  ;;  %v265_v6 = vld [vmem:[%s2357_s17 + $0x18] sm:$0xff] }
  0x13   : > { %244 = vst.msk [vmem:[#allocation2 + $0x120] sm:$0xff] %vm206_vm0, %v2254_v0  ;;  %245 = vst.msk [vmem:[#allocation2 + $0x128] sm:$0xff] %vm206_vm0, %v2254_v0  ;;  %v266_v7 = vld [vmem:[%s2357_s17 + $0x20] sm:$0xff]  ;;  %v267_v8 = vld [vmem:[%s2357_s17 + $0x28] sm:$0xff] }
  0x14   : > { %247 = vst.msk [vmem:[#allocation2 + $0x138] sm:$0xff] %vm206_vm0, %v2254_v0  ;;  %248 = vst.msk [vmem:[#allocation2 + $0x140] sm:$0xff] %vm206_vm0, %v2254_v0  ;;  %v268_v9 = vld [vmem:[%s2357_s17 + $0x30] sm:$0xff]  ;;  %v2378_v10 = vld [vmem:[%s2362_s20] sm:$0xff] }
  0x15   : > { %250 = vst.msk [vmem:[#allocation2 + $0x150] sm:$0xff] %vm206_vm0, %v2254_v0  ;;  %251 = vst.msk [vmem:[#allocation2 + $0x158] sm:$0xff] %vm206_vm0, %v2254_v0  ;;  %v269_v11 = vld [vmem:[%s2357_s17 + $0x38] sm:$0xff]  ;;  %v270_v12 = vld [vmem:[%s2357_s17 + $0x40] sm:$0xff]  ;;  %v2417_v32 = vrot.slane %v2378_v10, %v453_v14  ;;  %v2420_v33 = vrot.slane %v2378_v10, %v698_v15  ;;  %v2430_v38 = vrot.slane %v2378_v10, %v385_v19 }
  0x16   : > { %253 = vst.msk [vmem:[#allocation2 + $0x168] sm:$0xff] %vm206_vm0, %v2254_v0  ;;  %254 = vst.msk [vmem:[#allocation2 + $0x170] sm:$0xff] %vm206_vm0, %v2254_v0  ;;  %v271_v13 = vld [vmem:[%s2357_s17 + $0x48] sm:$0xff]  ;;  %v272_v16 = vld [vmem:[%s2357_s17 + $0x50] sm:$0xff]  ;;  %v2433_v39 = vrot.slane %v2378_v10, %v1011_v20  ;;  %v2442_v43 = vrot.slane %v2378_v10, %v1255_v24  ;;  %v2451_v47 = vrot.slane %v2378_v10, %v943_v28 }
  0x17   : > { %256 = vst.msk [vmem:[#allocation2 + $0x180] sm:$0xff] %vm206_vm0, %v2254_v0  ;;  %257 = vst.msk [vmem:[#allocation2 + $0x188] sm:$0xff] %vm206_vm0, %v2254_v0  ;;  %v273_v17 = vld [vmem:[%s2357_s17 + $0x58] sm:$0xff]  ;;  %v274_v18 = vld [vmem:[%s2357_s17 + $0x60] sm:$0xff]  ;;  %v2459_v52 = vrot.slane %v2378_v10, %v1567_v34  ;;  %v455_v55 = vmul.f32 %v2417_v32, %v327_v50  ;;  %v456_v56 = vmul.f32 %v2417_v32, %v328_v51 }
  0x18   : > { %259 = vst.msk [vmem:[#allocation2 + $0x198] sm:$0xff] %vm206_vm0, %v2254_v0  ;;  %260 = vst.msk [vmem:[#allocation2 + $0x1a0] sm:$0xff] %vm206_vm0, %v2254_v0  ;;  %v275_v21 = vld [vmem:[%s2357_s17 + $0x68] sm:$0xff]  ;;  %v276_v22 = vld [vmem:[%s2357_s17 + $0x70] sm:$0xff]  ;;  %v700_v57 = vmul.f32 %v2420_v33, %v327_v50  ;;  %v387_v59 = vmul.f32 %v2430_v38, %v327_v50  ;;  %v701_v60 = vmul.f32 %v2420_v33, %v328_v51 }
  0x19   : > { %210 = vst.msk [vmem:[#allocation2 + $0x10] sm:$0x3] %vm209_vm1, %v2254_v0  ;;  %213 = vst.msk [vmem:[#allocation2 + $0x28] sm:$0x3] %vm209_vm1, %v2254_v0  ;;  %v277_v23 = vld [vmem:[%s2357_s17 + $0x78] sm:$0xff]  ;;  %v278_v25 = vld [vmem:[%s2357_s17 + $0x80] sm:$0xff]  ;;  %v388_v28 = vmul.f32 %v2430_v38, %v328_v51 }
  0x1a   : > { %216 = vst.msk [vmem:[#allocation2 + $0x40] sm:$0x3] %vm209_vm1, %v2254_v0  ;;  %219 = vst.msk [vmem:[#allocation2 + $0x58] sm:$0x3] %vm209_vm1, %v2254_v0  ;;  %v279_v26 = vld [vmem:[%s2357_s17 + $0x88] sm:$0xff]  ;;  %v280_v27 = vld [vmem:[%s2357_s17 + $0x90] sm:$0xff] }
  0x1b   : > { %222 = vst.msk [vmem:[#allocation2 + $0x70] sm:$0x3] %vm209_vm1, %v2254_v0  ;;  %225 = vst.msk [vmem:[#allocation2 + $0x88] sm:$0x3] %vm209_vm1, %v2254_v0  ;;  %v281_v29 = vld [vmem:[%s2357_s17 + $0x98] sm:$0xff]  ;;  %v282_v30 = vld [vmem:[%s2357_s17 + $0xa0] sm:$0xff] }
  0x1c   : > { %228 = vst.msk [vmem:[#allocation2 + $0xa0] sm:$0x3] %vm209_vm1, %v2254_v0  ;;  %231 = vst.msk [vmem:[#allocation2 + $0xb8] sm:$0x3] %vm209_vm1, %v2254_v0  ;;  %v283_v31 = vld [vmem:[%s2357_s17 + $0xa8] sm:$0xff]  ;;  %v284_v35 = vld [vmem:[%s2357_s17 + $0xb0] sm:$0xff] }
  0x1d   : > { %234 = vst.msk [vmem:[#allocation2 + $0xd0] sm:$0x3] %vm209_vm1, %v2254_v0  ;;  %237 = vst.msk [vmem:[#allocation2 + $0xe8] sm:$0x3] %vm209_vm1, %v2254_v0  ;;  %v285_v36 = vld [vmem:[%s2357_s17 + $0xb8] sm:$0xff]  ;;  %v286_v37 = vld [vmem:[%s2357_s17 + $0xc0] sm:$0xff] }
  0x1e   : > { %240 = vst.msk [vmem:[#allocation2 + $0x100] sm:$0x3] %vm209_vm1, %v2254_v0  ;;  %243 = vst.msk [vmem:[#allocation2 + $0x118] sm:$0x3] %vm209_vm1, %v2254_v0  ;;  %v287_v40 = vld [vmem:[%s2357_s17 + $0xc8] sm:$0xff]  ;;  %v288_v41 = vld [vmem:[%s2357_s17 + $0xd0] sm:$0xff] }
  0x1f   : > { %246 = vst.msk [vmem:[#allocation2 + $0x130] sm:$0x3] %vm209_vm1, %v2254_v0  ;;  %249 = vst.msk [vmem:[#allocation2 + $0x148] sm:$0x3] %vm209_vm1, %v2254_v0  ;;  %v289_v42 = vld [vmem:[%s2357_s17 + $0xd8] sm:$0xff]  ;;  %v290_v44 = vld [vmem:[%s2357_s17 + $0xe0] sm:$0xff] }
  0x20   : > { %252 = vst.msk [vmem:[#allocation2 + $0x160] sm:$0x3] %vm209_vm1, %v2254_v0  ;;  %255 = vst.msk [vmem:[#allocation2 + $0x178] sm:$0x3] %vm209_vm1, %v2254_v0  ;;  %v291_v45 = vld [vmem:[%s2357_s17 + $0xe8] sm:$0xff]  ;;  %v292_v46 = vld [vmem:[%s2357_s17 + $0xf0] sm:$0xff] }
  0x21   : > { %258 = vst.msk [vmem:[#allocation2 + $0x190] sm:$0x3] %vm209_vm1, %v2254_v0  ;;  %261 = vst.msk [vmem:[#allocation2 + $0x1a8] sm:$0x3] %vm209_vm1, %v2254_v0  ;;  %v293_v49 = vld [vmem:[%s2357_s17 + $0xf8] sm:$0xff]  ;;  %v552_v63 = vrot.slane %v455_v55, 1 }
  0x22   : > { %295 = vst.msk [vmem:[#allocation2 + $0x19] sm:$0xff] %vm206_vm0, %v262_v2  ;;  %296 = vst.msk [vmem:[#allocation2 + $0x21] sm:$0xff] %vm206_vm0, %v263_v4  ;;  %v553_v0 = vrot.slane %v456_v56, 1  ;;  %v797_v1 = vrot.slane %v700_v57, 2  ;;  %v2480_v3 = vld [vmem:[%s2362_s20 + $0x8] ss:$0 sm:$0xff] }
  0x23   : > { %297 = vst.msk [vmem:[#allocation2 + $0x31] sm:$0xff] %vm206_vm0, %v264_v5  ;;  %298 = vst.msk [vmem:[#allocation2 + $0x39] sm:$0xff] %vm206_vm0, %v265_v6  ;;  %v798_v5 = vrot.slane %v701_v60, 2 }
  0x24   : > { %299 = vst.msk [vmem:[#allocation2 + $0x49] sm:$0xff] %vm206_vm0, %v266_v7  ;;  %300 = vst.msk [vmem:[#allocation2 + $0x51] sm:$0xff] %vm206_vm0, %v267_v8 }
  0x25   : > { %301 = vst.msk [vmem:[#allocation2 + $0x61] sm:$0xff] %vm206_vm0, %v268_v9  ;;  %302 = vst.msk [vmem:[#allocation2 + $0x69] sm:$0xff] %vm206_vm0, %v269_v11  ;;  %v2487_v9 = vrot.slane %v2378_v10, %v1499_v48  ;;  %v554_v11 = vsel %vm551_vm2, %v552_v63, %v553_v0  ;;  %v799_v15 = vsel %vm796_vm3, %v797_v1, %v798_v5 }
  0x26   : > { %303 = vst.msk [vmem:[#allocation2 + $0x79] sm:$0xff] %vm206_vm0, %v270_v12  ;;  %304 = vst.msk [vmem:[#allocation2 + $0x81] sm:$0xff] %vm206_vm0, %v271_v13  ;;  %v329_v13 = vld [vmem:[#allocation2 + $0x10] sm:$0x3]  ;;  %v664_v14 = vadd.f32 %v554_v11, %v387_v59 }
  0x27   : > { %305 = vst.msk [vmem:[#allocation2 + $0x91] sm:$0xff] %vm206_vm0, %v272_v16  ;;  %306 = vst.msk [vmem:[#allocation2 + $0x99] sm:$0xff] %vm206_vm0, %v273_v17 }
  0x28   : > { %307 = vst.msk [vmem:[#allocation2 + $0xa9] sm:$0xff] %vm206_vm0, %v274_v18  ;;  %308 = vst.msk [vmem:[#allocation2 + $0xb1] sm:$0xff] %vm206_vm0, %v275_v21 }
  0x29   : > { %309 = vst.msk [vmem:[#allocation2 + $0xc1] sm:$0xff] %vm206_vm0, %v276_v22  ;;  %310 = vst.msk [vmem:[#allocation2 + $0xc9] sm:$0xff] %vm206_vm0, %v277_v23  ;;  %v2462_v53 = vld [vmem:[#allocation2 + $0x18] sm:$0xff]  ;;  %v2464_v54 = vld [vmem:[#allocation2 + $0x20] sm:$0xff]  ;;  %v909_v22 = vadd.f32 %v799_v15, %v664_v14 }
  0x2a   : > { %311 = vst.msk [vmem:[#allocation2 + $0xd9] sm:$0xff] %vm206_vm0, %v278_v25  ;;  %312 = vst.msk [vmem:[#allocation2 + $0xe1] sm:$0xff] %vm206_vm0, %v279_v26  ;;  %v2469_v58 = vld [vmem:[#allocation2 + $0x30] sm:$0xff]  ;;  %v1013_v61 = vmul.f32 %v2433_v39, %v2462_v53  ;;  %v1014_v62 = vmul.f32 %v2433_v39, %v2464_v54  ;;  %v1257_v2 = vmul.f32 %v2442_v43, %v2462_v53  ;;  %v2482_v4 = vld [vmem:[#allocation2 + $0x38] sm:$0xff] }
  0x2b   : > { %313 = vst.msk [vmem:[#allocation2 + $0xf1] sm:$0xff] %vm206_vm0, %v280_v27  ;;  %314 = vst.msk [vmem:[#allocation2 + $0xf9] sm:$0xff] %vm206_vm0, %v281_v29  ;;  %v1258_v8 = vmul.f32 %v2442_v43, %v2464_v54  ;;  %v1569_v12 = vmul.f32 %v2459_v52, %v2469_v58  ;;  %v945_v16 = vmul.f32 %v2451_v47, %v2462_v53  ;;  %v2505_v21 = vld [vmem:[#allocation2 + $0x28] sm:$0x3]  ;;  %v2513_v34 = vld [vmem:[#allocation2 + $0x40] sm:$0x3] }
  0x2c   : > { %315 = vst.msk [vmem:[#allocation2 + $0x109] sm:$0xff] %vm206_vm0, %v282_v30  ;;  %316 = vst.msk [vmem:[#allocation2 + $0x111] sm:$0xff] %vm206_vm0, %v283_v31  ;;  %v1109_v6 = vrot.slane %v1013_v61, 1  ;;  %v1110_v7 = vrot.slane %v1014_v62, 1  ;;  %v1353_v17 = vrot.slane %v1257_v2, 2  ;;  %v2497_v19 = vmul.f32 %v2459_v52, %v2482_v4 }
  0x2d   : > { %317 = vst.msk [vmem:[#allocation2 + $0x121] sm:$0xff] %vm206_vm0, %v284_v35  ;;  %318 = vst.msk [vmem:[#allocation2 + $0x129] sm:$0xff] %vm206_vm0, %v285_v36  ;;  %v1354_v18 = vrot.slane %v1258_v8, 2  ;;  %v1813_v10 = vmul.f32 %v2480_v3, %v2469_v58  ;;  %v2503_v20 = vmul.f32 %v2480_v3, %v2482_v4  ;;  %v1665_v24 = vrot.slane %v1569_v12, 1 }
  0x2e   : > { %319 = vst.msk [vmem:[#allocation2 + $0x139] sm:$0xff] %vm206_vm0, %v286_v37  ;;  %320 = vst.msk [vmem:[#allocation2 + $0x141] sm:$0xff] %vm206_vm0, %v287_v40  ;;  %v1111_v23 = vsel %vm551_vm2, %v1109_v6, %v1110_v7  ;;  %v457_v25 = vmul.f32 %v2417_v32, %v329_v13  ;;  %v1666_v26 = vrot.slane %v2497_v19, 1  ;;  %v702_v29 = vmul.f32 %v2420_v33, %v329_v13 }
  0x2f   : > { %321 = vst.msk [vmem:[#allocation2 + $0x151] sm:$0xff] %vm206_vm0, %v288_v41  ;;  %322 = vst.msk [vmem:[#allocation2 + $0x159] sm:$0xff] %vm206_vm0, %v289_v42  ;;  %v1909_v27 = vrot.slane %v1813_v10, 2  ;;  %v977_v30 = vadd.f32 %v945_v16, %v909_v22  ;;  %v1910_v31 = vrot.slane %v2503_v20, 2  ;;  %v1015_v36 = vmul.f32 %v2433_v39, %v2505_v21 }
  0x30   : > { %323 = vst.msk [vmem:[#allocation2 + $0x169] sm:$0xff] %vm206_vm0, %v290_v44  ;;  %324 = vst.msk [vmem:[#allocation2 + $0x171] sm:$0xff] %vm206_vm0, %v291_v45  ;;  %v555_v35 = vrot.slane %v457_v25, 1  ;;  %v1355_v37 = vsel %vm796_vm3, %v1353_v17, %v1354_v18  ;;  %v1501_v40 = vmul.f32 %v2487_v9, %v2469_v58  ;;  %v800_v41 = vrot.slane %v702_v29, 2 }
  0x31   : > { %325 = vst.msk [vmem:[#allocation2 + $0x181] sm:$0xff] %vm206_vm0, %v292_v46  ;;  %326 = vst.msk [vmem:[#allocation2 + $0x189] sm:$0xff] %vm206_vm0, %v293_v49  ;;  %v1259_v42 = vmul.f32 %v2442_v43, %v2505_v21  ;;  %v1221_v44 = vadd.f32 %v1111_v23, %v977_v30  ;;  %v946_v46 = vmul.f32 %v2451_v47, %v2464_v54  ;;  %v1112_v48 = vrot.slane %v1015_v36, 1  ;;  %v2563_v23 = vld [vmem:[#allocation2 + $0x48] sm:$0xff] }
  0x32   : > { %v556_v45 = vsel %vm551_vm2, %v553_v0, %v555_v35  ;;  %v1667_v49 = vsel %vm551_vm2, %v1665_v24, %v1666_v26  ;;  %v801_v51 = vsel %vm796_vm3, %v798_v5, %v800_v41  ;;  %v1571_v55 = vmul.f32 %v2459_v52, %v2513_v34 }
  0x33   : > { %v665_v50 = vadd.f32 %v556_v45, %v388_v28  ;;  %v1465_v56 = vadd.f32 %v1355_v37, %v1221_v44  ;;  %v1911_v57 = vsel %vm796_vm3, %v1909_v27, %v1910_v31  ;;  %v1356_v59 = vrot.slane %v1259_v42, 2 }
  0x34   : > { %v1502_v60 = vmul.f32 %v2487_v9, %v2482_v4  ;;  %v1113_v62 = vsel %vm551_vm2, %v1110_v7, %v1112_v48  ;;  %v1815_v63 = vmul.f32 %v2480_v3, %v2513_v34  ;;  %v458_v0 = vmul.f32 %v2417_v32, %v2462_v53 }
  0x35   : > { %v910_v61 = vadd.f32 %v801_v51, %v665_v50  ;;  %v1533_v1 = vadd.f32 %v1501_v40, %v1465_v56  ;;  %v389_v2 = vmul.f32 %v2430_v38, %v2462_v53  ;;  %v2543_v5 = vmul.f32 %v2417_v32, %v2464_v54 }
  0x36   : > { %v703_v6 = vmul.f32 %v2420_v33, %v2462_v53  ;;  %v1668_v11 = vrot.slane %v1571_v55, 1  ;;  %v557_v7 = vrot.slane %v458_v0, 1  ;;  %v2549_v12 = vmul.f32 %v2420_v33, %v2464_v54 }
  0x37   : > { %v978_v8 = vadd.f32 %v946_v46, %v910_v61  ;;  %v1777_v13 = vadd.f32 %v1667_v49, %v1533_v1  ;;  %v1357_v14 = vsel %vm796_vm3, %v1354_v18, %v1356_v59  ;;  %v558_v15 = vrot.slane %v2543_v5, 1  ;;  %v2565_v18 = vld [vmem:[#allocation2 + $0x50] sm:$0xff] }
  0x38   : > { %v802_v16 = vrot.slane %v703_v6, 2  ;;  %v1912_v17 = vrot.slane %v1815_v63, 2  ;;  %v803_v19 = vrot.slane %v2549_v12, 2  ;;  %v1016_v10 = vmul.f32 %v2433_v39, %v2469_v58 }
  0x39   : > { %v1222_v53 = vadd.f32 %v1113_v62, %v978_v8  ;;  %v2021_v22 = vadd.f32 %v1911_v57, %v1777_v13  ;;  %v559_v24 = vsel %vm551_vm2, %v557_v7, %v558_v15  ;;  %v1017_v25 = vmul.f32 %v2433_v39, %v2482_v4 }
  0x3a   : > { %v1260_v27 = vmul.f32 %v2442_v43, %v2469_v58  ;;  %v1669_v29 = vsel %vm551_vm2, %v1666_v26, %v1668_v11  ;;  %v666_v30 = vadd.f32 %v559_v24, %v389_v2  ;;  %v1114_v35 = vrot.slane %v1016_v10, 1 }
  0x3b   : > { %v1466_v28 = vadd.f32 %v1357_v14, %v1222_v53  ;;  %2053 = vst.msk [vmem:[%s2558_s23] sm:$0xff] %vm206_vm0, %v2021_v22  ;;  %v804_v36 = vsel %vm796_vm3, %v802_v16, %v803_v19  ;;  %v947_v37 = vmul.f32 %v2451_v47, %v2469_v58  ;;  %v1115_v40 = vrot.slane %v1017_v25, 1 }
  0x3c   : > { %v1261_v41 = vmul.f32 %v2442_v43, %v2482_v4  ;;  %v911_v44 = vadd.f32 %v804_v36, %v666_v30  ;;  %v1572_v45 = vmul.f32 %v2459_v52, %v2563_v23  ;;  %v2584_v26 = vmul.f32 %v2459_v52, %v2565_v18 }
  0x3d   : > { %v1534_v42 = vadd.f32 %v1502_v60, %v1466_v28  ;;  %v1358_v46 = vrot.slane %v1260_v27, 2  ;;  %v1816_v49 = vmul.f32 %v2480_v3, %v2563_v23  ;;  %v2590_v50 = vmul.f32 %v2480_v3, %v2565_v18 }
  0x3e   : > { %v1359_v48 = vrot.slane %v1261_v41, 2  ;;  %v1913_v55 = vsel %vm796_vm3, %v1910_v31, %v1912_v17  ;;  %v979_v56 = vadd.f32 %v947_v37, %v911_v44  ;;  %v1116_v57 = vsel %vm551_vm2, %v1114_v35, %v1115_v40  ;;  %v2603_v31 = vld [vmem:[#allocation2 + $0x58] sm:$0x3] }
  0x3f   : > { %v1778_v51 = vadd.f32 %v1669_v29, %v1534_v42  ;;  %v1670_v59 = vrot.slane %v1572_v45, 1  ;;  %v1671_v60 = vrot.slane %v2584_v26, 1  ;;  %v1914_v61 = vrot.slane %v1816_v49, 2 }
  0x40   : > { %v1915_v62 = vrot.slane %v2590_v50, 2  ;;  %v1223_v0 = vadd.f32 %v1116_v57, %v979_v56  ;;  %v460_v1 = vmul.f32 %v2417_v32, %v2505_v21  ;;  %v1360_v2 = vsel %vm796_vm3, %v1358_v46, %v1359_v48 }
  0x41   : > { %v2022_v63 = vadd.f32 %v1913_v55, %v1778_v51  ;;  %v1503_v20 = vmul.f32 %v2487_v9, %v2563_v23  ;;  %v705_v5 = vmul.f32 %v2420_v33, %v2505_v21  ;;  %v1018_v6 = vmul.f32 %v2433_v39, %v2513_v34  ;;  %v2643_v51 = vld [vmem:[#allocation2 + $0x60] sm:$0xff] }
  0x42   : > { %v1467_v8 = vadd.f32 %v1360_v2, %v1223_v0  ;;  %v390_v11 = vmul.f32 %v2430_v38, %v2464_v54  ;;  %v560_v7 = vrot.slane %v460_v1, 1  ;;  %v1262_v12 = vmul.f32 %v2442_v43, %v2513_v34 }
  0x43   : > { %2054 = vst.msk [vmem:[%s2558_s23 + $0x8] sm:$0xff] %vm206_vm0, %v2022_v63  ;;  %v1672_v13 = vsel %vm551_vm2, %v1670_v59, %v1671_v60  ;;  %v1916_v14 = vsel %vm796_vm3, %v1914_v61, %v1915_v62  ;;  %v805_v16 = vrot.slane %v705_v5, 2  ;;  %v1117_v53 = vrot.slane %v1018_v6, 1  ;;  %v2650_v59 = vld [vmem:[#allocation2 + $0x68] sm:$0xff] }
  0x44   : > { %v1535_v21 = vadd.f32 %v1503_v20, %v1467_v8  ;;  %v561_v17 = vsel %vm551_vm2, %v558_v15, %v560_v7  ;;  %v948_v10 = vmul.f32 %v2451_v47, %v2482_v4  ;;  %v1574_v22 = vmul.f32 %v2459_v52, %v2603_v31 }
  0x45   : > { %v667_v54 = vadd.f32 %v561_v17, %v390_v11  ;;  %v1361_v24 = vrot.slane %v1262_v12, 2  ;;  %v1504_v25 = vmul.f32 %v2487_v9, %v2565_v18  ;;  %v1818_v27 = vmul.f32 %v2480_v3, %v2603_v31 }
  0x46   : > { %v1779_v28 = vadd.f32 %v1672_v13, %v1535_v21  ;;  %v806_v29 = vsel %vm796_vm3, %v803_v19, %v805_v16  ;;  %v391_v15 = vmul.f32 %v2430_v38, %v2469_v58  ;;  %v461_v30 = vmul.f32 %v2417_v32, %v2469_v58 }
  0x47   : > { %v912_v35 = vadd.f32 %v806_v29, %v667_v54  ;;  %v1118_v36 = vsel %vm551_vm2, %v1115_v40, %v1117_v53  ;;  %v462_v37 = vmul.f32 %v2417_v32, %v2482_v4  ;;  %v706_v41 = vmul.f32 %v2420_v33, %v2469_v58 }
  0x48   : > { %v2023_v42 = vadd.f32 %v1916_v14, %v1779_v28  ;;  %v1673_v44 = vrot.slane %v1574_v22, 1  ;;  %v562_v45 = vrot.slane %v461_v30, 1  ;;  %v2638_v19 = vmul.f32 %v2420_v33, %v2482_v4  ;;  %v2686_v30 = vld [vmem:[#allocation2 + $0x70] sm:$0x3] }
  0x49   : > { %v980_v26 = vadd.f32 %v948_v10, %v912_v35  ;;  %v1917_v46 = vrot.slane %v1818_v27, 2  ;;  %v563_v49 = vrot.slane %v462_v37, 1  ;;  %v807_v50 = vrot.slane %v706_v41, 2 }
  0x4a   : > { %2055 = vst.msk [vmem:[%s2558_s23 + $0x10] sm:$0xff] %vm206_vm0, %v2023_v42  ;;  %v1362_v40 = vsel %vm796_vm3, %v1359_v48, %v1361_v24  ;;  %v808_v55 = vrot.slane %v2638_v19, 2  ;;  %v1019_v58 = vmul.f32 %v2433_v39, %v2563_v23  ;;  %v1020_v56 = vmul.f32 %v2433_v39, %v2565_v18 }
  0x4b   : > { %v1224_v57 = vadd.f32 %v1118_v36, %v980_v26  ;;  %v564_v61 = vsel %vm551_vm2, %v562_v45, %v563_v49  ;;  %v1263_v63 = vmul.f32 %v2442_v43, %v2563_v23  ;;  %v2657_v48 = vmul.f32 %v2442_v43, %v2565_v18 }
  0x4c   : > { %v1674_v0 = vsel %vm551_vm2, %v1671_v60, %v1673_v44  ;;  %v668_v1 = vadd.f32 %v564_v61, %v391_v15  ;;  %v1119_v2 = vrot.slane %v1019_v58, 1  ;;  %v1120_v20 = vrot.slane %v1020_v56, 1 }
  0x4d   : > { %v1468_v5 = vadd.f32 %v1362_v40, %v1224_v57  ;;  %v1918_v6 = vsel %vm796_vm3, %v1915_v62, %v1917_v46  ;;  %v809_v8 = vsel %vm796_vm3, %v807_v50, %v808_v55  ;;  %v1575_v11 = vmul.f32 %v2459_v52, %v2643_v51 }
  0x4e   : > { %v913_v7 = vadd.f32 %v809_v8, %v668_v1  ;;  %v949_v12 = vmul.f32 %v2451_v47, %v2563_v23  ;;  %v2668_v13 = vmul.f32 %v2459_v52, %v2650_v59  ;;  %v1819_v60 = vmul.f32 %v2480_v3, %v2643_v51 }
  0x4f   : > { %v1536_v14 = vadd.f32 %v1504_v25, %v1468_v5  ;;  %v1363_v16 = vrot.slane %v1263_v63, 2  ;;  %v1364_v62 = vrot.slane %v2657_v48, 2  ;;  %v2675_v53 = vmul.f32 %v2480_v3, %v2650_v59 }
  0x50   : > { %v981_v21 = vadd.f32 %v949_v12, %v913_v7  ;;  %v1121_v17 = vsel %vm551_vm2, %v1119_v2, %v1120_v20  ;;  %v1505_v10 = vmul.f32 %v2487_v9, %v2643_v51  ;;  %v1675_v22 = vrot.slane %v1575_v11, 1 }
  0x51   : > { %v1780_v54 = vadd.f32 %v1674_v0, %v1536_v14  ;;  %v1676_v24 = vrot.slane %v2668_v13, 1  ;;  %v463_v25 = vmul.f32 %v2417_v32, %v2513_v34  ;;  %v708_v27 = vmul.f32 %v2420_v33, %v2513_v34 }
  0x52   : > { %v1225_v28 = vadd.f32 %v1121_v17, %v981_v21  ;;  %v1919_v29 = vrot.slane %v1819_v60, 2  ;;  %v1920_v15 = vrot.slane %v2675_v53, 2  ;;  %v1021_v35 = vmul.f32 %v2433_v39, %v2603_v31 }
  0x53   : > { %v2024_v36 = vadd.f32 %v1918_v6, %v1780_v54  ;;  %v1365_v37 = vsel %vm796_vm3, %v1363_v16, %v1364_v62  ;;  %v565_v41 = vrot.slane %v463_v25, 1  ;;  %v810_v42 = vrot.slane %v708_v27, 2 }
  0x54   : > { %v1469_v44 = vadd.f32 %v1365_v37, %v1225_v28  ;;  %v392_v45 = vmul.f32 %v2430_v38, %v2482_v4  ;;  %v1122_v19 = vrot.slane %v1021_v35, 1  ;;  %v1265_v34 = vmul.f32 %v2442_v43, %v2603_v31  ;;  %v2742_v28 = vld [vmem:[#allocation2 + $0x80] sm:$0xff] }
  0x55   : > { %2056 = vst.msk [vmem:[%s2558_s23 + $0x18] sm:$0xff] %vm206_vm0, %v2024_v36  ;;  %v1677_v26 = vsel %vm551_vm2, %v1675_v22, %v1676_v24  ;;  %v566_v46 = vsel %vm551_vm2, %v563_v49, %v565_v41  ;;  %v1577_v50 = vmul.f32 %v2459_v52, %v2686_v30  ;;  %v1821_v40 = vmul.f32 %v2480_v3, %v2686_v30  ;;  %v2735_v22 = vld [vmem:[#allocation2 + $0x78] sm:$0xff] }
  0x56   : > { %v1537_v58 = vadd.f32 %v1505_v10, %v1469_v44  ;;  %v1921_v4 = vsel %vm796_vm3, %v1919_v29, %v1920_v15  ;;  %v669_v56 = vadd.f32 %v566_v46, %v392_v45  ;;  %v950_v57 = vmul.f32 %v2451_v47, %v2565_v18 }
  0x57   : > { %v811_v61 = vsel %vm796_vm3, %v808_v55, %v810_v42  ;;  %v1123_v63 = vsel %vm551_vm2, %v1120_v20, %v1122_v19  ;;  %v1506_v49 = vmul.f32 %v2487_v9, %v2650_v59  ;;  %v464_v48 = vmul.f32 %v2417_v32, %v2563_v23 }
  0x58   : > { %v1781_v0 = vadd.f32 %v1677_v26, %v1537_v58  ;;  %v914_v1 = vadd.f32 %v811_v61, %v669_v56  ;;  %v1366_v2 = vrot.slane %v1265_v34, 2  ;;  %v2718_v5 = vmul.f32 %v2417_v32, %v2565_v18 }
  0x59   : > { %v1678_v6 = vrot.slane %v1577_v50, 1  ;;  %v1922_v8 = vrot.slane %v1821_v40, 2  ;;  %v567_v11 = vrot.slane %v464_v48, 1  ;;  %v709_v55 = vmul.f32 %v2420_v33, %v2563_v23 }
  0x5a   : > { %v2025_v20 = vadd.f32 %v1921_v4, %v1781_v0  ;;  %v982_v7 = vadd.f32 %v950_v57, %v914_v1  ;;  %v568_v12 = vrot.slane %v2718_v5, 1  ;;  %v2725_v60 = vmul.f32 %v2420_v33, %v2565_v18  ;;  %v2772_v1 = vld [vmem:[#allocation2 + $0x88] sm:$0x3] }
  0x5b   : > { %v393_v14 = vmul.f32 %v2430_v38, %v2563_v23  ;;  %v812_v16 = vrot.slane %v709_v55, 2  ;;  %v1022_v21 = vmul.f32 %v2433_v39, %v2643_v51  ;;  %v1023_v17 = vmul.f32 %v2433_v39, %v2650_v59 }
  0x5c   : > { %2057 = vst.msk [vmem:[%s2558_s23 + $0x20] sm:$0xff] %vm206_vm0, %v2025_v20  ;;  %v1226_v10 = vadd.f32 %v1123_v63, %v982_v7  ;;  %v569_v54 = vsel %vm551_vm2, %v567_v11, %v568_v12  ;;  %v813_v25 = vrot.slane %v2725_v60, 2  ;;  %v1266_v27 = vmul.f32 %v2442_v43, %v2643_v51 }
  0x5d   : > { %v1367_v23 = vsel %vm796_vm3, %v1364_v62, %v1366_v2  ;;  %v670_v29 = vadd.f32 %v569_v54, %v393_v14  ;;  %v1124_v35 = vrot.slane %v1022_v21, 1  ;;  %v1267_v36 = vmul.f32 %v2442_v43, %v2650_v59 }
  0x5e   : > { %v1470_v37 = vadd.f32 %v1367_v23, %v1226_v10  ;;  %v814_v41 = vsel %vm796_vm3, %v812_v16, %v813_v25  ;;  %v1125_v42 = vrot.slane %v1023_v17, 1  ;;  %v1368_v44 = vrot.slane %v1266_v27, 2 }
  0x5f   : > { %v915_v45 = vadd.f32 %v814_v41, %v670_v29  ;;  %v951_v19 = vmul.f32 %v2451_v47, %v2643_v51  ;;  %v1369_v34 = vrot.slane %v1267_v36, 2  ;;  %v1578_v62 = vmul.f32 %v2459_v52, %v2735_v22 }
  0x60   : > { %v1538_v26 = vadd.f32 %v1506_v49, %v1470_v37  ;;  %v2753_v46 = vmul.f32 %v2459_v52, %v2742_v28  ;;  %v1822_v50 = vmul.f32 %v2480_v3, %v2735_v22  ;;  %v2759_v40 = vmul.f32 %v2480_v3, %v2742_v28 }
  0x61   : > { %v1679_v58 = vsel %vm551_vm2, %v1676_v24, %v1678_v6  ;;  %v1923_v4 = vsel %vm796_vm3, %v1920_v15, %v1922_v8  ;;  %v983_v56 = vadd.f32 %v951_v19, %v915_v45  ;;  %v1507_v57 = vmul.f32 %v2487_v9, %v2735_v22 }
  0x62   : > { %v1782_v61 = vadd.f32 %v1679_v58, %v1538_v26  ;;  %v1126_v63 = vsel %vm551_vm2, %v1124_v35, %v1125_v42  ;;  %v1370_v49 = vsel %vm796_vm3, %v1368_v44, %v1369_v34  ;;  %v1680_v48 = vrot.slane %v1578_v62, 1  ;;  %v2815_v58 = vld [vmem:[#allocation2 + $0x90] sm:$0xff] }
  0x63   : > { %v1227_v0 = vadd.f32 %v1126_v63, %v983_v56  ;;  %v1681_v13 = vrot.slane %v2753_v46, 1  ;;  %v466_v53 = vmul.f32 %v2417_v32, %v2603_v31  ;;  %v711_v24 = vmul.f32 %v2420_v33, %v2603_v31 }
  0x64   : > { %v2026_v15 = vadd.f32 %v1923_v4, %v1782_v61  ;;  %v1924_v2 = vrot.slane %v1822_v50, 2  ;;  %v1925_v5 = vrot.slane %v2759_v40, 2  ;;  %v1024_v6 = vmul.f32 %v2433_v39, %v2686_v30 }
  0x65   : > { %v1471_v8 = vadd.f32 %v1370_v49, %v1227_v0  ;;  %v570_v11 = vrot.slane %v466_v53, 1  ;;  %v815_v55 = vrot.slane %v711_v24, 2  ;;  %v1268_v20 = vmul.f32 %v2442_v43, %v2686_v30  ;;  %v2822_v49 = vld [vmem:[#allocation2 + $0x98] sm:$0xff] }
  0x66   : > { %2058 = vst.msk [vmem:[%s2558_s23 + $0x28] sm:$0xff] %vm206_vm0, %v2026_v15  ;;  %v394_v7 = vmul.f32 %v2430_v38, %v2565_v18  ;;  %v1127_v60 = vrot.slane %v1024_v6, 1  ;;  %v1580_v31 = vmul.f32 %v2459_v52, %v2772_v1  ;;  %v1824_v14 = vmul.f32 %v2480_v3, %v2772_v1 }
  0x67   : > { %v1539_v16 = vadd.f32 %v1507_v57, %v1471_v8  ;;  %v1682_v21 = vsel %vm551_vm2, %v1680_v48, %v1681_v13  ;;  %v571_v17 = vsel %vm551_vm2, %v568_v12, %v570_v11  ;;  %v952_v10 = vmul.f32 %v2451_v47, %v2650_v59 }
  0x68   : > { %v1926_v54 = vsel %vm796_vm3, %v1924_v2, %v1925_v5  ;;  %v671_v27 = vadd.f32 %v571_v17, %v394_v7  ;;  %v1371_v23 = vrot.slane %v1268_v20, 2  ;;  %v1508_v18 = vmul.f32 %v2487_v9, %v2742_v28 }
  0x69   : > { %v1783_v29 = vadd.f32 %v1682_v21, %v1539_v16  ;;  %v816_v35 = vsel %vm796_vm3, %v813_v25, %v815_v55  ;;  %v1128_v36 = vsel %vm551_vm2, %v1125_v42, %v1127_v60  ;;  %v467_v37 = vmul.f32 %v2417_v32, %v2643_v51 }
  0x6a   : > { %v916_v12 = vadd.f32 %v816_v35, %v671_v27  ;;  %v1683_v41 = vrot.slane %v1580_v31, 1  ;;  %v1927_v44 = vrot.slane %v1824_v14, 2  ;;  %v468_v45 = vmul.f32 %v2417_v32, %v2650_v59 }
  0x6b   : > { %v2027_v19 = vadd.f32 %v1926_v54, %v1783_v29  ;;  %v572_v62 = vrot.slane %v467_v37, 1  ;;  %v712_v26 = vmul.f32 %v2420_v33, %v2643_v51  ;;  %v2808_v46 = vmul.f32 %v2420_v33, %v2650_v59  ;;  %v2858_v37 = vld [vmem:[#allocation2 + $0xa0] sm:$0x3] }
  0x6c   : > { %v984_v25 = vadd.f32 %v952_v10, %v916_v12  ;;  %v1372_v42 = vsel %vm796_vm3, %v1369_v34, %v1371_v23  ;;  %v573_v50 = vrot.slane %v468_v45, 1  ;;  %v1025_v40 = vmul.f32 %v2433_v39, %v2735_v22 }
  0x6d   : > { %2059 = vst.msk [vmem:[%s2558_s23 + $0x30] sm:$0xff] %vm206_vm0, %v2027_v19  ;;  %v395_v4 = vmul.f32 %v2430_v38, %v2643_v51  ;;  %v817_v56 = vrot.slane %v712_v26, 2  ;;  %v818_v57 = vrot.slane %v2808_v46, 2  ;;  %v1026_v61 = vmul.f32 %v2433_v39, %v2742_v28 }
  0x6e   : > { %v1228_v63 = vadd.f32 %v1128_v36, %v984_v25  ;;  %v574_v34 = vsel %vm551_vm2, %v572_v62, %v573_v50  ;;  %v1269_v48 = vmul.f32 %v2442_v43, %v2735_v22  ;;  %v2829_v0 = vmul.f32 %v2442_v43, %v2742_v28 }
  0x6f   : > { %v1684_v51 = vsel %vm551_vm2, %v1681_v13, %v1683_v41  ;;  %v672_v53 = vadd.f32 %v574_v34, %v395_v4  ;;  %v1129_v24 = vrot.slane %v1025_v40, 1  ;;  %v1130_v15 = vrot.slane %v1026_v61, 1 }
  0x70   : > { %v1472_v2 = vadd.f32 %v1372_v42, %v1228_v63  ;;  %v1928_v6 = vsel %vm796_vm3, %v1925_v5, %v1927_v44  ;;  %v819_v8 = vsel %vm796_vm3, %v817_v56, %v818_v57  ;;  %v1581_v11 = vmul.f32 %v2459_v52, %v2815_v58 }
  0x71   : > { %v917_v55 = vadd.f32 %v819_v8, %v672_v53  ;;  %v953_v20 = vmul.f32 %v2451_v47, %v2735_v22  ;;  %v2840_v7 = vmul.f32 %v2459_v52, %v2822_v49  ;;  %v1825_v13 = vmul.f32 %v2480_v3, %v2815_v58 }
  0x72   : > { %v1540_v60 = vadd.f32 %v1508_v18, %v1472_v2  ;;  %v1373_v31 = vrot.slane %v1269_v48, 2  ;;  %v1374_v5 = vrot.slane %v2829_v0, 2  ;;  %v2847_v14 = vmul.f32 %v2480_v3, %v2822_v49 }
  0x73   : > { %v985_v16 = vadd.f32 %v953_v20, %v917_v55  ;;  %v1131_v21 = vsel %vm551_vm2, %v1129_v24, %v1130_v15  ;;  %v1509_v17 = vmul.f32 %v2487_v9, %v2815_v58  ;;  %v1685_v10 = vrot.slane %v1581_v11, 1 }
  0x74   : > { %v1784_v54 = vadd.f32 %v1684_v51, %v1540_v60  ;;  %v1686_v27 = vrot.slane %v2840_v7, 1  ;;  %v469_v23 = vmul.f32 %v2417_v32, %v2686_v30  ;;  %v714_v18 = vmul.f32 %v2420_v33, %v2686_v30 }
  0x75   : > { %v1229_v29 = vadd.f32 %v1131_v21, %v985_v16  ;;  %v1929_v35 = vrot.slane %v1825_v13, 2  ;;  %v1930_v36 = vrot.slane %v2847_v14, 2  ;;  %v1027_v12 = vmul.f32 %v2433_v39, %v2772_v1 }
  0x76   : > { %v2028_v41 = vadd.f32 %v1928_v6, %v1784_v54  ;;  %v1375_v44 = vsel %vm796_vm3, %v1373_v31, %v1374_v5  ;;  %v575_v45 = vrot.slane %v469_v23, 1  ;;  %v820_v19 = vrot.slane %v714_v18, 2 }
  0x77   : > { %v1473_v62 = vadd.f32 %v1375_v44, %v1229_v29  ;;  %v396_v26 = vmul.f32 %v2430_v38, %v2650_v59  ;;  %v1132_v46 = vrot.slane %v1027_v12, 1  ;;  %v1271_v30 = vmul.f32 %v2442_v43, %v2772_v1  ;;  %v2914_v29 = vld [vmem:[#allocation2 + $0xb0] sm:$0xff] }
  0x78   : > { %2060 = vst.msk [vmem:[%s2558_s23 + $0x38] sm:$0xff] %vm206_vm0, %v2028_v41  ;;  %v1687_v25 = vsel %vm551_vm2, %v1685_v10, %v1686_v27  ;;  %v576_v42 = vsel %vm551_vm2, %v573_v50, %v575_v45  ;;  %v1583_v40 = vmul.f32 %v2459_v52, %v2858_v37  ;;  %v1827_v4 = vmul.f32 %v2480_v3, %v2858_v37  ;;  %v2907_v10 = vld [vmem:[#allocation2 + $0xa8] sm:$0xff] }
  0x79   : > { %v1541_v56 = vadd.f32 %v1509_v17, %v1473_v62  ;;  %v1931_v59 = vsel %vm796_vm3, %v1929_v35, %v1930_v36  ;;  %v673_v61 = vadd.f32 %v576_v42, %v396_v26  ;;  %v954_v63 = vmul.f32 %v2451_v47, %v2742_v28 }
  0x7a   : > { %v821_v34 = vsel %vm796_vm3, %v818_v57, %v820_v19  ;;  %v1133_v48 = vsel %vm551_vm2, %v1130_v15, %v1132_v46  ;;  %v1510_v50 = vmul.f32 %v2487_v9, %v2822_v49  ;;  %v470_v0 = vmul.f32 %v2417_v32, %v2735_v22 }
  0x7b   : > { %v1785_v51 = vadd.f32 %v1687_v25, %v1541_v56  ;;  %v918_v53 = vadd.f32 %v821_v34, %v673_v61  ;;  %v1376_v24 = vrot.slane %v1271_v30, 2  ;;  %v2890_v2 = vmul.f32 %v2417_v32, %v2742_v28 }
  0x7c   : > { %v1688_v6 = vrot.slane %v1583_v40, 1  ;;  %v1932_v8 = vrot.slane %v1827_v4, 2  ;;  %v577_v11 = vrot.slane %v470_v0, 1  ;;  %v715_v57 = vmul.f32 %v2420_v33, %v2735_v22 }
  0x7d   : > { %v2029_v15 = vadd.f32 %v1931_v59, %v1785_v51  ;;  %v986_v55 = vadd.f32 %v954_v63, %v918_v53  ;;  %v578_v20 = vrot.slane %v2890_v2, 1  ;;  %v2897_v13 = vmul.f32 %v2420_v33, %v2742_v28  ;;  %v2944_v53 = vld [vmem:[#allocation2 + $0xb8] sm:$0x3] }
  0x7e   : > { %v397_v60 = vmul.f32 %v2430_v38, %v2735_v22  ;;  %v822_v31 = vrot.slane %v715_v57, 2  ;;  %v1028_v16 = vmul.f32 %v2433_v39, %v2815_v58  ;;  %v1029_v21 = vmul.f32 %v2433_v39, %v2822_v49 }
  0x7f   : > { %2061 = vst.msk [vmem:[%s2558_s23 + $0x40] sm:$0xff] %vm206_vm0, %v2029_v15  ;;  %v1230_v17 = vadd.f32 %v1133_v48, %v986_v55  ;;  %v579_v54 = vsel %vm551_vm2, %v577_v11, %v578_v20  ;;  %v823_v23 = vrot.slane %v2897_v13, 2  ;;  %v1272_v18 = vmul.f32 %v2442_v43, %v2815_v58 }
  0x80   : > { %v1377_v22 = vsel %vm796_vm3, %v1374_v5, %v1376_v24  ;;  %v674_v35 = vadd.f32 %v579_v54, %v397_v60  ;;  %v1134_v12 = vrot.slane %v1028_v16, 1  ;;  %v1273_v41 = vmul.f32 %v2442_v43, %v2822_v49 }
  0x81   : > { %v1474_v44 = vadd.f32 %v1377_v22, %v1230_v17  ;;  %v824_v45 = vsel %vm796_vm3, %v822_v31, %v823_v23  ;;  %v1135_v19 = vrot.slane %v1029_v21, 1  ;;  %v1378_v62 = vrot.slane %v1272_v18, 2 }
  0x82   : > { %v919_v26 = vadd.f32 %v824_v45, %v674_v35  ;;  %v955_v46 = vmul.f32 %v2451_v47, %v2815_v58  ;;  %v1379_v30 = vrot.slane %v1273_v41, 2  ;;  %v1584_v5 = vmul.f32 %v2459_v52, %v2907_v10 }
  0x83   : > { %v1542_v25 = vadd.f32 %v1510_v50, %v1474_v44  ;;  %v2925_v42 = vmul.f32 %v2459_v52, %v2914_v29  ;;  %v1828_v40 = vmul.f32 %v2480_v3, %v2907_v10  ;;  %v2931_v4 = vmul.f32 %v2480_v3, %v2914_v29 }
  0x84   : > { %v1689_v56 = vsel %vm551_vm2, %v1686_v27, %v1688_v6  ;;  %v1933_v59 = vsel %vm796_vm3, %v1930_v36, %v1932_v8  ;;  %v987_v61 = vadd.f32 %v955_v46, %v919_v26  ;;  %v1511_v63 = vmul.f32 %v2487_v9, %v2907_v10 }
  0x85   : > { %v1786_v34 = vadd.f32 %v1689_v56, %v1542_v25  ;;  %v1136_v48 = vsel %vm551_vm2, %v1134_v12, %v1135_v19  ;;  %v1380_v50 = vsel %vm796_vm3, %v1378_v62, %v1379_v30  ;;  %v1690_v0 = vrot.slane %v1584_v5, 1  ;;  %v2987_v56 = vld [vmem:[#allocation2 + $0xc0] sm:$0xff] }
  0x86   : > { %v1231_v51 = vadd.f32 %v1136_v48, %v987_v61  ;;  %v1691_v7 = vrot.slane %v2925_v42, 1  ;;  %v472_v14 = vmul.f32 %v2417_v32, %v2772_v1  ;;  %v717_v27 = vmul.f32 %v2420_v33, %v2772_v1 }
  0x87   : > { %v2030_v36 = vadd.f32 %v1933_v59, %v1786_v34  ;;  %v1934_v24 = vrot.slane %v1828_v40, 2  ;;  %v1935_v2 = vrot.slane %v2931_v4, 2  ;;  %v1030_v6 = vmul.f32 %v2433_v39, %v2858_v37 }
  0x88   : > { %v1475_v8 = vadd.f32 %v1380_v50, %v1231_v51  ;;  %v580_v11 = vrot.slane %v472_v14, 1  ;;  %v825_v57 = vrot.slane %v717_v27, 2  ;;  %v1274_v15 = vmul.f32 %v2442_v43, %v2858_v37  ;;  %v2994_v50 = vld [vmem:[#allocation2 + $0xc8] sm:$0xff] }
  0x89   : > { %2062 = vst.msk [vmem:[%s2558_s23 + $0x48] sm:$0xff] %vm206_vm0, %v2030_v36  ;;  %v398_v55 = vmul.f32 %v2430_v38, %v2742_v28  ;;  %v1137_v13 = vrot.slane %v1030_v6, 1  ;;  %v1586_v1 = vmul.f32 %v2459_v52, %v2944_v53  ;;  %v1830_v60 = vmul.f32 %v2480_v3, %v2944_v53 }
  0x8a   : > { %v1543_v31 = vadd.f32 %v1511_v63, %v1475_v8  ;;  %v1692_v16 = vsel %vm551_vm2, %v1690_v0, %v1691_v7  ;;  %v581_v21 = vsel %vm551_vm2, %v578_v20, %v580_v11  ;;  %v956_v17 = vmul.f32 %v2451_v47, %v2822_v49 }
  0x8b   : > { %v1936_v54 = vsel %vm796_vm3, %v1934_v24, %v1935_v2  ;;  %v675_v18 = vadd.f32 %v581_v21, %v398_v55  ;;  %v1381_v22 = vrot.slane %v1274_v15, 2  ;;  %v1512_v28 = vmul.f32 %v2487_v9, %v2914_v29 }
  0x8c   : > { %v1787_v35 = vadd.f32 %v1692_v16, %v1543_v31  ;;  %v826_v12 = vsel %vm796_vm3, %v823_v23, %v825_v57  ;;  %v1138_v41 = vsel %vm551_vm2, %v1135_v19, %v1137_v13  ;;  %v473_v44 = vmul.f32 %v2417_v32, %v2815_v58 }
  0x8d   : > { %v920_v20 = vadd.f32 %v826_v12, %v675_v18  ;;  %v1693_v45 = vrot.slane %v1586_v1, 1  ;;  %v1937_v62 = vrot.slane %v1830_v60, 2  ;;  %v474_v26 = vmul.f32 %v2417_v32, %v2822_v49 }
  0x8e   : > { %v2031_v46 = vadd.f32 %v1936_v54, %v1787_v35  ;;  %v582_v5 = vrot.slane %v473_v44, 1  ;;  %v718_v25 = vmul.f32 %v2420_v33, %v2815_v58  ;;  %v2980_v42 = vmul.f32 %v2420_v33, %v2822_v49  ;;  %v3030_v44 = vld [vmem:[#allocation2 + $0xd0] sm:$0x3] }
  0x8f   : > { %v988_v23 = vadd.f32 %v956_v17, %v920_v20  ;;  %v1382_v19 = vsel %vm796_vm3, %v1379_v30, %v1381_v22  ;;  %v583_v40 = vrot.slane %v474_v26, 1  ;;  %v1031_v4 = vmul.f32 %v2433_v39, %v2907_v10 }
  0x90   : > { %2063 = vst.msk [vmem:[%s2558_s23 + $0x50] sm:$0xff] %vm206_vm0, %v2031_v46  ;;  %v399_v59 = vmul.f32 %v2430_v38, %v2815_v58  ;;  %v827_v61 = vrot.slane %v718_v25, 2  ;;  %v828_v63 = vrot.slane %v2980_v42, 2  ;;  %v1032_v34 = vmul.f32 %v2433_v39, %v2914_v29 }
  0x91   : > { %v1232_v48 = vadd.f32 %v1138_v41, %v988_v23  ;;  %v584_v30 = vsel %vm551_vm2, %v582_v5, %v583_v40  ;;  %v1275_v0 = vmul.f32 %v2442_v43, %v2907_v10  ;;  %v3001_v51 = vmul.f32 %v2442_v43, %v2914_v29 }
  0x92   : > { %v1694_v58 = vsel %vm551_vm2, %v1691_v7, %v1693_v45  ;;  %v676_v14 = vadd.f32 %v584_v30, %v399_v59  ;;  %v1139_v27 = vrot.slane %v1031_v4, 1  ;;  %v1140_v36 = vrot.slane %v1032_v34, 1 }
  0x93   : > { %v1476_v24 = vadd.f32 %v1382_v19, %v1232_v48  ;;  %v1938_v6 = vsel %vm796_vm3, %v1935_v2, %v1937_v62  ;;  %v829_v8 = vsel %vm796_vm3, %v827_v61, %v828_v63  ;;  %v1587_v11 = vmul.f32 %v2459_v52, %v2987_v56 }
  0x94   : > { %v921_v57 = vadd.f32 %v829_v8, %v676_v14  ;;  %v957_v15 = vmul.f32 %v2451_v47, %v2907_v10  ;;  %v3012_v55 = vmul.f32 %v2459_v52, %v2994_v50  ;;  %v1831_v7 = vmul.f32 %v2480_v3, %v2987_v56 }
  0x95   : > { %v1544_v13 = vadd.f32 %v1512_v28, %v1476_v24  ;;  %v1383_v1 = vrot.slane %v1275_v0, 2  ;;  %v1384_v2 = vrot.slane %v3001_v51, 2  ;;  %v3019_v60 = vmul.f32 %v2480_v3, %v2994_v50 }
  0x96   : > { %v989_v31 = vadd.f32 %v957_v15, %v921_v57  ;;  %v1141_v16 = vsel %vm551_vm2, %v1139_v27, %v1140_v36  ;;  %v1513_v21 = vmul.f32 %v2487_v9, %v2987_v56  ;;  %v1695_v17 = vrot.slane %v1587_v11, 1 }
  0x97   : > { %v1788_v54 = vadd.f32 %v1694_v58, %v1544_v13  ;;  %v1696_v18 = vrot.slane %v3012_v55, 1  ;;  %v475_v22 = vmul.f32 %v2417_v32, %v2858_v37  ;;  %v720_v28 = vmul.f32 %v2420_v33, %v2858_v37 }
  0x98   : > { %v1233_v35 = vadd.f32 %v1141_v16, %v989_v31  ;;  %v1939_v12 = vrot.slane %v1831_v7, 2  ;;  %v1940_v41 = vrot.slane %v3019_v60, 2  ;;  %v1033_v20 = vmul.f32 %v2433_v39, %v2944_v53 }
  0x99   : > { %v2032_v45 = vadd.f32 %v1938_v6, %v1788_v54  ;;  %v1385_v62 = vsel %vm796_vm3, %v1383_v1, %v1384_v2  ;;  %v585_v26 = vrot.slane %v475_v22, 1  ;;  %v830_v46 = vrot.slane %v720_v28, 2  ;;  %v3088_v28 = vld [vmem:[#allocation2 + $0xe0] sm:$0xff] }
  0x9a   : > { %v1477_v5 = vadd.f32 %v1385_v62, %v1233_v35  ;;  %v400_v25 = vmul.f32 %v2430_v38, %v2822_v49  ;;  %v1142_v42 = vrot.slane %v1033_v20, 1  ;;  %v1277_v37 = vmul.f32 %v2442_v43, %v2944_v53 }
  0x9b   : > { %2064 = vst.msk [vmem:[%s2558_s23 + $0x58] sm:$0xff] %vm206_vm0, %v2032_v45  ;;  %v1697_v23 = vsel %vm551_vm2, %v1695_v17, %v1696_v18  ;;  %v586_v19 = vsel %vm551_vm2, %v583_v40, %v585_v26  ;;  %v1589_v4 = vmul.f32 %v2459_v52, %v3030_v44  ;;  %v1833_v59 = vmul.f32 %v2480_v3, %v3030_v44 }
  0x9c   : > { %v1545_v61 = vadd.f32 %v1513_v21, %v1477_v5  ;;  %v1941_v49 = vsel %vm796_vm3, %v1939_v12, %v1940_v41  ;;  %v677_v34 = vadd.f32 %v586_v19, %v400_v25  ;;  %v958_v48 = vmul.f32 %v2451_v47, %v2914_v29  ;;  %v3081_v21 = vld [vmem:[#allocation2 + $0xd8] sm:$0xff]  ;;  %v3106_v19 = vld [vmem:[%s2362_s20 + $0x8] ss:$0 sm:$0xff] }
  0x9d   : > { %v831_v30 = vsel %vm796_vm3, %v828_v63, %v830_v46  ;;  %v1143_v0 = vsel %vm551_vm2, %v1140_v36, %v1142_v42  ;;  %v1514_v40 = vmul.f32 %v2487_v9, %v2994_v50  ;;  %v476_v51 = vmul.f32 %v2417_v32, %v2907_v10 }
  0x9e   : > { %v1789_v3 = vadd.f32 %v1697_v23, %v1545_v61  ;;  %v922_v58 = vadd.f32 %v831_v30, %v677_v34  ;;  %v1386_v14 = vrot.slane %v1277_v37, 2  ;;  %v3062_v27 = vmul.f32 %v2417_v32, %v2914_v29 }
  0x9f   : > { %v1698_v24 = vrot.slane %v1589_v4, 1  ;;  %v1942_v6 = vrot.slane %v1833_v59, 2  ;;  %v587_v8 = vrot.slane %v476_v51, 1  ;;  %v721_v63 = vmul.f32 %v2420_v33, %v2907_v10 }
  0xa0   : > { %v2033_v36 = vadd.f32 %v1941_v49, %v1789_v3  ;;  %v990_v11 = vadd.f32 %v958_v48, %v922_v58  ;;  %v588_v57 = vrot.slane %v3062_v27, 1  ;;  %v3069_v15 = vmul.f32 %v2420_v33, %v2914_v29  ;;  %v3125_v58 = vld [vmem:[#allocation2 + $0xe8] sm:$0x3] }
  0xa1   : > { %v401_v7 = vmul.f32 %v2430_v38, %v2907_v10  ;;  %v832_v13 = vrot.slane %v721_v63, 2  ;;  %v1034_v1 = vmul.f32 %v2433_v39, %v2987_v56  ;;  %v3077_v31 = vmul.f32 %v2433_v39, %v2994_v50 }
  0xa2   : > { %2065 = vst.msk [vmem:[%s2558_s23 + $0x60] sm:$0xff] %vm206_vm0, %v2033_v36  ;;  %v1234_v16 = vadd.f32 %v1143_v0, %v990_v11  ;;  %v589_v17 = vsel %vm551_vm2, %v587_v8, %v588_v57  ;;  %v833_v54 = vrot.slane %v3069_v15, 2  ;;  %v1278_v10 = vmul.f32 %v2442_v43, %v2987_v56 }
  0xa3   : > { %v1387_v22 = vsel %vm796_vm3, %v1384_v2, %v1386_v14  ;;  %v678_v35 = vadd.f32 %v589_v17, %v401_v7  ;;  %v1144_v12 = vrot.slane %v1034_v1, 1  ;;  %v3092_v20 = vmul.f32 %v2442_v43, %v2994_v50 }
  0xa4   : > { %v1478_v45 = vadd.f32 %v1387_v22, %v1234_v16  ;;  %v834_v62 = vsel %vm796_vm3, %v832_v13, %v833_v54  ;;  %v1145_v26 = vrot.slane %v3077_v31, 1  ;;  %v1388_v46 = vrot.slane %v1278_v10, 2 }
  0xa5   : > { %v923_v5 = vadd.f32 %v834_v62, %v678_v35  ;;  %v959_v25 = vmul.f32 %v2451_v47, %v2987_v56  ;;  %v1389_v2 = vrot.slane %v3092_v20, 2  ;;  %v1590_v42 = vmul.f32 %v2459_v52, %v3081_v21 }
  0xa6   : > { %v1546_v37 = vadd.f32 %v1514_v40, %v1478_v45  ;;  %v3103_v23 = vmul.f32 %v2459_v52, %v3088_v28  ;;  %v1834_v4 = vmul.f32 %v3106_v19, %v3081_v21  ;;  %v3112_v59 = vmul.f32 %v3106_v19, %v3088_v28 }
  0xa7   : > { %v1699_v61 = vsel %vm551_vm2, %v1696_v18, %v1698_v24  ;;  %v1943_v49 = vsel %vm796_vm3, %v1940_v41, %v1942_v6  ;;  %v991_v34 = vadd.f32 %v959_v25, %v923_v5  ;;  %v1515_v48 = vmul.f32 %v2487_v9, %v3081_v21 }
  0xa8   : > { %v1790_v30 = vadd.f32 %v1699_v61, %v1546_v37  ;;  %v1146_v0 = vsel %vm551_vm2, %v1144_v12, %v1145_v26  ;;  %v1390_v40 = vsel %vm796_vm3, %v1388_v46, %v1389_v2  ;;  %v1700_v51 = vrot.slane %v1590_v42, 1  ;;  %v3168_v61 = vld [vmem:[#allocation2 + $0xf0] sm:$0xff] }
  0xa9   : > { %v1235_v3 = vadd.f32 %v1146_v0, %v991_v34  ;;  %v1701_v55 = vrot.slane %v3103_v23, 1  ;;  %v478_v60 = vmul.f32 %v2417_v32, %v2944_v53  ;;  %v723_v18 = vmul.f32 %v2420_v33, %v2944_v53 }
  0xaa   : > { %v2034_v41 = vadd.f32 %v1943_v49, %v1790_v30  ;;  %v1944_v14 = vrot.slane %v1834_v4, 2  ;;  %v1945_v27 = vrot.slane %v3112_v59, 2  ;;  %v1036_v24 = vmul.f32 %v2433_v39, %v3030_v44 }
  0xab   : > { %v1479_v6 = vadd.f32 %v1390_v40, %v1235_v3  ;;  %v590_v8 = vrot.slane %v478_v60, 1  ;;  %v835_v63 = vrot.slane %v723_v18, 2  ;;  %v1280_v36 = vmul.f32 %v2442_v43, %v3030_v44  ;;  %v3175_v40 = vld [vmem:[#allocation2 + $0xf8] sm:$0xff] }
  0xac   : > { %2066 = vst.msk [vmem:[%s2558_s23 + $0x68] sm:$0xff] %vm206_vm0, %v2034_v41  ;;  %v402_v11 = vmul.f32 %v2430_v38, %v2914_v29  ;;  %v1147_v15 = vrot.slane %v1036_v24, 1  ;;  %v1592_v53 = vmul.f32 %v2459_v52, %v3125_v58  ;;  %v1836_v7 = vmul.f32 %v3106_v19, %v3125_v58 }
  0xad   : > { %v1547_v13 = vadd.f32 %v1515_v48, %v1479_v6  ;;  %v1702_v1 = vsel %vm551_vm2, %v1700_v51, %v1701_v55  ;;  %v591_v31 = vsel %vm551_vm2, %v588_v57, %v590_v8  ;;  %v960_v16 = vmul.f32 %v2451_v47, %v2994_v50 }
  0xae   : > { %v1946_v17 = vsel %vm796_vm3, %v1944_v14, %v1945_v27  ;;  %v679_v10 = vadd.f32 %v591_v31, %v402_v11  ;;  %v1391_v22 = vrot.slane %v1280_v36, 2  ;;  %v1516_v29 = vmul.f32 %v2487_v9, %v3088_v28 }
  0xaf   : > { %v1791_v35 = vadd.f32 %v1702_v1, %v1547_v13  ;;  %v836_v12 = vsel %vm796_vm3, %v833_v54, %v835_v63  ;;  %v1148_v20 = vsel %vm551_vm2, %v1145_v26, %v1147_v15  ;;  %v479_v45 = vmul.f32 %v2417_v32, %v2987_v56 }
  0xb0   : > { %v924_v57 = vadd.f32 %v836_v12, %v679_v10  ;;  %v1703_v62 = vrot.slane %v1592_v53, 1  ;;  %v1947_v46 = vrot.slane %v1836_v7, 2  ;;  %v480_v5 = vmul.f32 %v2417_v32, %v2994_v50 }
  0xb1   : > { %v2035_v25 = vadd.f32 %v1946_v17, %v1791_v35  ;;  %v592_v42 = vrot.slane %v479_v45, 1  ;;  %v724_v37 = vmul.f32 %v2420_v33, %v2987_v56  ;;  %v3161_v23 = vmul.f32 %v2420_v33, %v2994_v50  ;;  %v3211_v45 = vld [vmem:[#allocation2 + $0x100] sm:$0x3] }
  0xb2   : > { %v992_v54 = vadd.f32 %v960_v16, %v924_v57  ;;  %v1392_v26 = vsel %vm796_vm3, %v1389_v2, %v1391_v22  ;;  %v593_v4 = vrot.slane %v480_v5, 1  ;;  %v1037_v59 = vmul.f32 %v2433_v39, %v3081_v21 }
  0xb3   : > { %2067 = vst.msk [vmem:[%s2558_s23 + $0x70] sm:$0xff] %vm206_vm0, %v2035_v25  ;;  %v403_v49 = vmul.f32 %v2430_v38, %v2987_v56  ;;  %v837_v34 = vrot.slane %v724_v37, 2  ;;  %v838_v48 = vrot.slane %v3161_v23, 2  ;;  %v1038_v30 = vmul.f32 %v2433_v39, %v3088_v28 }
  0xb4   : > { %v1236_v0 = vadd.f32 %v1148_v20, %v992_v54  ;;  %v594_v2 = vsel %vm551_vm2, %v592_v42, %v593_v4  ;;  %v1281_v51 = vmul.f32 %v2442_v43, %v3081_v21  ;;  %v3182_v3 = vmul.f32 %v2442_v43, %v3088_v28 }
  0xb5   : > { %v1704_v56 = vsel %vm551_vm2, %v1701_v55, %v1703_v62  ;;  %v680_v60 = vadd.f32 %v594_v2, %v403_v49  ;;  %v1149_v18 = vrot.slane %v1037_v59, 1  ;;  %v1150_v41 = vrot.slane %v1038_v30, 1 }
  0xb6   : > { %v1480_v14 = vadd.f32 %v1392_v26, %v1236_v0  ;;  %v1948_v24 = vsel %vm796_vm3, %v1945_v27, %v1947_v46  ;;  %v839_v6 = vsel %vm796_vm3, %v837_v34, %v838_v48  ;;  %v1593_v8 = vmul.f32 %v2459_v52, %v3168_v61 }
  0xb7   : > { %v925_v63 = vadd.f32 %v839_v6, %v680_v60  ;;  %v961_v36 = vmul.f32 %v2451_v47, %v3081_v21  ;;  %v3193_v11 = vmul.f32 %v2459_v52, %v3175_v40  ;;  %v1837_v55 = vmul.f32 %v3106_v19, %v3168_v61 }
  0xb8   : > { %v1548_v15 = vadd.f32 %v1516_v29, %v1480_v14  ;;  %v1393_v53 = vrot.slane %v1281_v51, 2  ;;  %v1394_v27 = vrot.slane %v3182_v3, 2  ;;  %v3200_v7 = vmul.f32 %v3106_v19, %v3175_v40 }
  0xb9   : > { %v993_v13 = vadd.f32 %v961_v36, %v925_v63  ;;  %v1151_v1 = vsel %vm551_vm2, %v1149_v18, %v1150_v41  ;;  %v1517_v31 = vmul.f32 %v2487_v9, %v3168_v61  ;;  %v1705_v16 = vrot.slane %v1593_v8, 1 }
  0xba   : > { %v1792_v17 = vadd.f32 %v1704_v56, %v1548_v15  ;;  %v1706_v10 = vrot.slane %v3193_v11, 1  ;;  %v481_v22 = vmul.f32 %v2417_v32, %v3030_v44  ;;  %v726_v29 = vmul.f32 %v2420_v33, %v3030_v44 }
  0xbb   : > { %v1237_v35 = vadd.f32 %v1151_v1, %v993_v13  ;;  %v1949_v12 = vrot.slane %v1837_v55, 2  ;;  %v1950_v20 = vrot.slane %v3200_v7, 2  ;;  %v1039_v57 = vmul.f32 %v2433_v39, %v3125_v58 }
  0xbc   : > { %v2036_v62 = vadd.f32 %v1948_v24, %v1792_v17  ;;  %v1395_v46 = vsel %vm796_vm3, %v1393_v53, %v1394_v27  ;;  %v595_v5 = vrot.slane %v481_v22, 1  ;;  %v840_v25 = vrot.slane %v726_v29, 2 }
  0xbd   : > { %v1481_v42 = vadd.f32 %v1395_v46, %v1237_v35  ;;  %v404_v37 = vmul.f32 %v2430_v38, %v2994_v50  ;;  %v1152_v23 = vrot.slane %v1039_v57, 1  ;;  %v1283_v44 = vmul.f32 %v2442_v43, %v3125_v58  ;;  %v3267_v35 = vld [vmem:[#allocation2 + $0x110] sm:$0xff] }
  0xbe   : > { %2068 = vst.msk [vmem:[%s2558_s23 + $0x78] sm:$0xff] %vm206_vm0, %v2036_v62  ;;  %v1707_v54 = vsel %vm551_vm2, %v1705_v16, %v1706_v10  ;;  %v596_v26 = vsel %vm551_vm2, %v593_v4, %v595_v5  ;;  %v1595_v59 = vmul.f32 %v2459_v52, %v3211_v45  ;;  %v1839_v49 = vmul.f32 %v3106_v19, %v3211_v45  ;;  %v3260_v16 = vld [vmem:[#allocation2 + $0x108] sm:$0xff] }
  0xbf   : > { %v1549_v34 = vadd.f32 %v1517_v31, %v1481_v42  ;;  %v1951_v50 = vsel %vm796_vm3, %v1949_v12, %v1950_v20  ;;  %v681_v30 = vadd.f32 %v596_v26, %v404_v37  ;;  %v962_v0 = vmul.f32 %v2451_v47, %v3088_v28 }
  0xc0   : > { %v841_v2 = vsel %vm796_vm3, %v838_v48, %v840_v25  ;;  %v1153_v51 = vsel %vm551_vm2, %v1150_v41, %v1152_v23  ;;  %v1518_v4 = vmul.f32 %v2487_v9, %v3175_v40  ;;  %v482_v3 = vmul.f32 %v2417_v32, %v3081_v21 }
  0xc1   : > { %v1793_v56 = vadd.f32 %v1707_v54, %v1549_v34  ;;  %v926_v60 = vadd.f32 %v841_v2, %v681_v30  ;;  %v1396_v18 = vrot.slane %v1283_v44, 2  ;;  %v3243_v14 = vmul.f32 %v2417_v32, %v3088_v28 }
  0xc2   : > { %v1708_v24 = vrot.slane %v1595_v59, 1  ;;  %v1952_v6 = vrot.slane %v1839_v49, 2  ;;  %v597_v8 = vrot.slane %v482_v3, 1  ;;  %v727_v48 = vmul.f32 %v2420_v33, %v3081_v21 }
  0xc3   : > { %v2037_v41 = vadd.f32 %v1951_v50, %v1793_v56  ;;  %v994_v63 = vadd.f32 %v962_v0, %v926_v60  ;;  %v598_v36 = vrot.slane %v3243_v14, 1  ;;  %v3250_v55 = vmul.f32 %v2420_v33, %v3088_v28  ;;  %v3297_v60 = vld [vmem:[#allocation2 + $0x118] sm:$0x3] }
  0xc4   : > { %v405_v15 = vmul.f32 %v2430_v38, %v3081_v21  ;;  %v842_v53 = vrot.slane %v727_v48, 2  ;;  %v1040_v13 = vmul.f32 %v2433_v39, %v3168_v61  ;;  %v1041_v1 = vmul.f32 %v2433_v39, %v3175_v40 }
  0xc5   : > { %2069 = vst.msk [vmem:[%s2558_s23 + $0x80] sm:$0xff] %vm206_vm0, %v2037_v41  ;;  %v1238_v31 = vadd.f32 %v1153_v51, %v994_v63  ;;  %v599_v17 = vsel %vm551_vm2, %v597_v8, %v598_v36  ;;  %v843_v22 = vrot.slane %v3250_v55, 2  ;;  %v1284_v29 = vmul.f32 %v2442_v43, %v3168_v61 }
  0xc6   : > { %v1397_v21 = vsel %vm796_vm3, %v1394_v27, %v1396_v18  ;;  %v682_v12 = vadd.f32 %v599_v17, %v405_v15  ;;  %v1154_v57 = vrot.slane %v1040_v13, 1  ;;  %v1285_v62 = vmul.f32 %v2442_v43, %v3175_v40 }
  0xc7   : > { %v1482_v46 = vadd.f32 %v1397_v21, %v1238_v31  ;;  %v844_v5 = vsel %vm796_vm3, %v842_v53, %v843_v22  ;;  %v1155_v25 = vrot.slane %v1041_v1, 1  ;;  %v1398_v42 = vrot.slane %v1284_v29, 2 }
  0xc8   : > { %v927_v37 = vadd.f32 %v844_v5, %v682_v12  ;;  %v963_v23 = vmul.f32 %v2451_v47, %v3168_v61  ;;  %v1399_v44 = vrot.slane %v1285_v62, 2  ;;  %v1596_v27 = vmul.f32 %v2459_v52, %v3260_v16 }
  0xc9   : > { %v1550_v54 = vadd.f32 %v1518_v4, %v1482_v46  ;;  %v3278_v26 = vmul.f32 %v2459_v52, %v3267_v35  ;;  %v1840_v59 = vmul.f32 %v3106_v19, %v3260_v16  ;;  %v3284_v49 = vmul.f32 %v3106_v19, %v3267_v35 }
  0xca   : > { %v1709_v34 = vsel %vm551_vm2, %v1706_v10, %v1708_v24  ;;  %v1953_v50 = vsel %vm796_vm3, %v1950_v20, %v1952_v6  ;;  %v995_v30 = vadd.f32 %v963_v23, %v927_v37  ;;  %v1519_v0 = vmul.f32 %v2487_v9, %v3260_v16 }
  0xcb   : > { %v1794_v2 = vadd.f32 %v1709_v34, %v1550_v54  ;;  %v1156_v51 = vsel %vm551_vm2, %v1154_v57, %v1155_v25  ;;  %v1400_v4 = vsel %vm796_vm3, %v1398_v42, %v1399_v44  ;;  %v1710_v3 = vrot.slane %v1596_v27, 1  ;;  %v3340_v34 = vld [vmem:[#allocation2 + $0x120] sm:$0xff] }
  0xcc   : > { %v1239_v56 = vadd.f32 %v1156_v51, %v995_v30  ;;  %v1711_v11 = vrot.slane %v3278_v26, 1  ;;  %v484_v7 = vmul.f32 %v2417_v32, %v3125_v58  ;;  %v729_v10 = vmul.f32 %v2420_v33, %v3125_v58 }
  0xcd   : > { %v2038_v20 = vadd.f32 %v1953_v50, %v1794_v2  ;;  %v1954_v18 = vrot.slane %v1840_v59, 2  ;;  %v1955_v14 = vrot.slane %v3284_v49, 2  ;;  %v1042_v24 = vmul.f32 %v2433_v39, %v3211_v45 }
  0xce   : > { %v1483_v6 = vadd.f32 %v1400_v4, %v1239_v56  ;;  %v600_v8 = vrot.slane %v484_v7, 1  ;;  %v845_v48 = vrot.slane %v729_v10, 2  ;;  %v1286_v41 = vmul.f32 %v2442_v43, %v3211_v45  ;;  %v3347_v4 = vld [vmem:[#allocation2 + $0x128] sm:$0xff] }
  0xcf   : > { %2070 = vst.msk [vmem:[%s2558_s23 + $0x88] sm:$0xff] %vm206_vm0, %v2038_v20  ;;  %v406_v63 = vmul.f32 %v2430_v38, %v3088_v28  ;;  %v1157_v55 = vrot.slane %v1042_v24, 1  ;;  %v1598_v58 = vmul.f32 %v2459_v52, %v3297_v60  ;;  %v1842_v15 = vmul.f32 %v3106_v19, %v3297_v60 }
  0xd0   : > { %v1551_v53 = vadd.f32 %v1519_v0, %v1483_v6  ;;  %v1712_v13 = vsel %vm551_vm2, %v1710_v3, %v1711_v11  ;;  %v601_v1 = vsel %vm551_vm2, %v598_v36, %v600_v8  ;;  %v964_v31 = vmul.f32 %v2451_v47, %v3175_v40 }
  0xd1   : > { %v1956_v17 = vsel %vm796_vm3, %v1954_v18, %v1955_v14  ;;  %v683_v29 = vadd.f32 %v601_v1, %v406_v63  ;;  %v1401_v21 = vrot.slane %v1286_v41, 2  ;;  %v1520_v28 = vmul.f32 %v2487_v9, %v3267_v35 }
  0xd2   : > { %v1795_v12 = vadd.f32 %v1712_v13, %v1551_v53  ;;  %v846_v57 = vsel %vm796_vm3, %v843_v22, %v845_v48  ;;  %v1158_v62 = vsel %vm551_vm2, %v1155_v25, %v1157_v55  ;;  %v485_v46 = vmul.f32 %v2417_v32, %v3168_v61 }
  0xd3   : > { %v928_v36 = vadd.f32 %v846_v57, %v683_v29  ;;  %v1713_v5 = vrot.slane %v1598_v58, 1  ;;  %v1957_v42 = vrot.slane %v1842_v15, 2  ;;  %v486_v37 = vmul.f32 %v2417_v32, %v3175_v40 }
  0xd4   : > { %v2039_v23 = vadd.f32 %v1956_v17, %v1795_v12  ;;  %v602_v27 = vrot.slane %v485_v46, 1  ;;  %v730_v54 = vmul.f32 %v2420_v33, %v3168_v61  ;;  %v3333_v26 = vmul.f32 %v2420_v33, %v3175_v40  ;;  %v3383_v46 = vld [vmem:[#allocation2 + $0x130] sm:$0x3] }
  0xd5   : > { %v996_v22 = vadd.f32 %v964_v31, %v928_v36  ;;  %v1402_v25 = vsel %vm796_vm3, %v1399_v44, %v1401_v21  ;;  %v603_v59 = vrot.slane %v486_v37, 1  ;;  %v1043_v49 = vmul.f32 %v2433_v39, %v3260_v16 }
  0xd6   : > { %2071 = vst.msk [vmem:[%s2558_s23 + $0x90] sm:$0xff] %vm206_vm0, %v2039_v23  ;;  %v407_v50 = vmul.f32 %v2430_v38, %v3168_v61  ;;  %v847_v30 = vrot.slane %v730_v54, 2  ;;  %v848_v0 = vrot.slane %v3333_v26, 2  ;;  %v1044_v2 = vmul.f32 %v2433_v39, %v3267_v35 }
  0xd7   : > { %v1240_v51 = vadd.f32 %v1158_v62, %v996_v22  ;;  %v604_v44 = vsel %vm551_vm2, %v602_v27, %v603_v59  ;;  %v1287_v3 = vmul.f32 %v2442_v43, %v3260_v16  ;;  %v3354_v56 = vmul.f32 %v2442_v43, %v3267_v35 }
  0xd8   : > { %v1714_v61 = vsel %vm551_vm2, %v1711_v11, %v1713_v5  ;;  %v684_v7 = vadd.f32 %v604_v44, %v407_v50  ;;  %v1159_v10 = vrot.slane %v1043_v49, 1  ;;  %v1160_v20 = vrot.slane %v1044_v2, 1 }
  0xd9   : > { %v1484_v18 = vadd.f32 %v1402_v25, %v1240_v51  ;;  %v1958_v24 = vsel %vm796_vm3, %v1955_v14, %v1957_v42  ;;  %v849_v6 = vsel %vm796_vm3, %v847_v30, %v848_v0  ;;  %v1599_v8 = vmul.f32 %v2459_v52, %v3340_v34 }
  0xda   : > { %v929_v48 = vadd.f32 %v849_v6, %v684_v7  ;;  %v965_v41 = vmul.f32 %v2451_v47, %v3260_v16  ;;  %v3365_v63 = vmul.f32 %v2459_v52, %v3347_v4  ;;  %v1843_v11 = vmul.f32 %v3106_v19, %v3340_v34 }
  0xdb   : > { %v1552_v55 = vadd.f32 %v1520_v28, %v1484_v18  ;;  %v1403_v58 = vrot.slane %v1287_v3, 2  ;;  %v1404_v14 = vrot.slane %v3354_v56, 2  ;;  %v3372_v15 = vmul.f32 %v3106_v19, %v3347_v4 }
  0xdc   : > { %v997_v53 = vadd.f32 %v965_v41, %v929_v48  ;;  %v1161_v13 = vsel %vm551_vm2, %v1159_v10, %v1160_v20  ;;  %v1521_v1 = vmul.f32 %v2487_v9, %v3340_v34  ;;  %v1715_v31 = vrot.slane %v1599_v8, 1 }
  0xdd   : > { %v1796_v17 = vadd.f32 %v1714_v61, %v1552_v55  ;;  %v1716_v29 = vrot.slane %v3365_v63, 1  ;;  %v487_v21 = vmul.f32 %v2417_v32, %v3211_v45  ;;  %v732_v28 = vmul.f32 %v2420_v33, %v3211_v45 }
  0xde   : > { %v1241_v12 = vadd.f32 %v1161_v13, %v997_v53  ;;  %v1959_v57 = vrot.slane %v1843_v11, 2  ;;  %v1960_v62 = vrot.slane %v3372_v15, 2  ;;  %v1045_v36 = vmul.f32 %v2433_v39, %v3297_v60 }
  0xdf   : > { %v2040_v5 = vadd.f32 %v1958_v24, %v1796_v17  ;;  %v1405_v42 = vsel %vm796_vm3, %v1403_v58, %v1404_v14  ;;  %v605_v37 = vrot.slane %v487_v21, 1  ;;  %v850_v23 = vrot.slane %v732_v28, 2 }
  0xe0   : > { %v1485_v27 = vadd.f32 %v1405_v42, %v1241_v12  ;;  %v408_v54 = vmul.f32 %v2430_v38, %v3175_v40  ;;  %v1162_v26 = vrot.slane %v1045_v36, 1  ;;  %v1289_v45 = vmul.f32 %v2442_v43, %v3297_v60  ;;  %v3439_v12 = vld [vmem:[#allocation2 + $0x140] sm:$0xff] }
  0xe1   : > { %2072 = vst.msk [vmem:[%s2558_s23 + $0x98] sm:$0xff] %vm206_vm0, %v2040_v5  ;;  %v1717_v22 = vsel %vm551_vm2, %v1715_v31, %v1716_v29  ;;  %v606_v25 = vsel %vm551_vm2, %v603_v59, %v605_v37  ;;  %v1601_v49 = vmul.f32 %v2459_v52, %v3383_v46  ;;  %v1845_v50 = vmul.f32 %v3106_v19, %v3383_v46  ;;  %v3432_v31 = vld [vmem:[#allocation2 + $0x138] sm:$0xff] }
  0xe2   : > { %v1553_v30 = vadd.f32 %v1521_v1, %v1485_v27  ;;  %v1961_v40 = vsel %vm796_vm3, %v1959_v57, %v1960_v62  ;;  %v685_v2 = vadd.f32 %v606_v25, %v408_v54  ;;  %v966_v51 = vmul.f32 %v2451_v47, %v3267_v35 }
  0xe3   : > { %v851_v44 = vsel %vm796_vm3, %v848_v0, %v850_v23  ;;  %v1163_v3 = vsel %vm551_vm2, %v1160_v20, %v1162_v26  ;;  %v1522_v59 = vmul.f32 %v2487_v9, %v3347_v4  ;;  %v488_v56 = vmul.f32 %v2417_v32, %v3260_v16 }
  0xe4   : > { %v1797_v61 = vadd.f32 %v1717_v22, %v1553_v30  ;;  %v930_v7 = vadd.f32 %v851_v44, %v685_v2  ;;  %v1406_v10 = vrot.slane %v1289_v45, 2  ;;  %v3415_v18 = vmul.f32 %v2417_v32, %v3267_v35 }
  0xe5   : > { %v1718_v24 = vrot.slane %v1601_v49, 1  ;;  %v1962_v6 = vrot.slane %v1845_v50, 2  ;;  %v607_v8 = vrot.slane %v488_v56, 1  ;;  %v733_v0 = vmul.f32 %v2420_v33, %v3260_v16 }
  0xe6   : > { %v2041_v20 = vadd.f32 %v1961_v40, %v1797_v61  ;;  %v998_v48 = vadd.f32 %v966_v51, %v930_v7  ;;  %v608_v41 = vrot.slane %v3415_v18, 1  ;;  %v3422_v11 = vmul.f32 %v2420_v33, %v3267_v35  ;;  %v3469_v7 = vld [vmem:[#allocation2 + $0x148] sm:$0x3] }
  0xe7   : > { %v409_v55 = vmul.f32 %v2430_v38, %v3260_v16  ;;  %v852_v58 = vrot.slane %v733_v0, 2  ;;  %v1046_v53 = vmul.f32 %v2433_v39, %v3340_v34  ;;  %v1047_v13 = vmul.f32 %v2433_v39, %v3347_v4 }
  0xe8   : > { %2073 = vst.msk [vmem:[%s2558_s23 + $0xa0] sm:$0xff] %vm206_vm0, %v2041_v20  ;;  %v1242_v1 = vadd.f32 %v1163_v3, %v998_v48  ;;  %v609_v17 = vsel %vm551_vm2, %v607_v8, %v608_v41  ;;  %v853_v21 = vrot.slane %v3422_v11, 2  ;;  %v1290_v28 = vmul.f32 %v2442_v43, %v3340_v34 }
  0xe9   : > { %v1407_v16 = vsel %vm796_vm3, %v1404_v14, %v1406_v10  ;;  %v686_v57 = vadd.f32 %v609_v17, %v409_v55  ;;  %v1164_v36 = vrot.slane %v1046_v53, 1  ;;  %v1291_v5 = vmul.f32 %v2442_v43, %v3347_v4 }
  0xea   : > { %v1486_v42 = vadd.f32 %v1407_v16, %v1242_v1  ;;  %v854_v37 = vsel %vm796_vm3, %v852_v58, %v853_v21  ;;  %v1165_v23 = vrot.slane %v1047_v13, 1  ;;  %v1408_v27 = vrot.slane %v1290_v28, 2 }
  0xeb   : > { %v931_v54 = vadd.f32 %v854_v37, %v686_v57  ;;  %v967_v26 = vmul.f32 %v2451_v47, %v3340_v34  ;;  %v1409_v45 = vrot.slane %v1291_v5, 2  ;;  %v1602_v14 = vmul.f32 %v2459_v52, %v3432_v31 }
  0xec   : > { %v1554_v22 = vadd.f32 %v1522_v59, %v1486_v42  ;;  %v3450_v25 = vmul.f32 %v2459_v52, %v3439_v12  ;;  %v1846_v49 = vmul.f32 %v3106_v19, %v3432_v31  ;;  %v3456_v50 = vmul.f32 %v3106_v19, %v3439_v12 }
  0xed   : > { %v1719_v30 = vsel %vm551_vm2, %v1716_v29, %v1718_v24  ;;  %v1963_v40 = vsel %vm796_vm3, %v1960_v62, %v1962_v6  ;;  %v999_v2 = vadd.f32 %v967_v26, %v931_v54  ;;  %v1523_v51 = vmul.f32 %v2487_v9, %v3432_v31 }
  0xee   : > { %v1798_v44 = vadd.f32 %v1719_v30, %v1554_v22  ;;  %v1166_v3 = vsel %vm551_vm2, %v1164_v36, %v1165_v23  ;;  %v1410_v59 = vsel %vm796_vm3, %v1408_v27, %v1409_v45  ;;  %v1720_v56 = vrot.slane %v1602_v14, 1  ;;  %v3512_v30 = vld [vmem:[#allocation2 + $0x150] sm:$0xff] }
  0xef   : > { %v1243_v61 = vadd.f32 %v1166_v3, %v999_v2  ;;  %v1721_v63 = vrot.slane %v3450_v25, 1  ;;  %v490_v15 = vmul.f32 %v2417_v32, %v3297_v60  ;;  %v735_v29 = vmul.f32 %v2420_v33, %v3297_v60 }
  0xf0   : > { %v2042_v62 = vadd.f32 %v1963_v40, %v1798_v44  ;;  %v1964_v10 = vrot.slane %v1846_v49, 2  ;;  %v1965_v18 = vrot.slane %v3456_v50, 2  ;;  %v1048_v24 = vmul.f32 %v2433_v39, %v3383_v46 }
  0xf1   : > { %v1487_v6 = vadd.f32 %v1410_v59, %v1243_v61  ;;  %v610_v8 = vrot.slane %v490_v15, 1  ;;  %v855_v0 = vrot.slane %v735_v29, 2  ;;  %v1292_v20 = vmul.f32 %v2442_v43, %v3383_v46  ;;  %v3519_v59 = vld [vmem:[#allocation2 + $0x158] sm:$0xff] }
  0xf2   : > { %2074 = vst.msk [vmem:[%s2558_s23 + $0xa8] sm:$0xff] %vm206_vm0, %v2042_v62  ;;  %v410_v48 = vmul.f32 %v2430_v38, %v3267_v35  ;;  %v1167_v11 = vrot.slane %v1048_v24, 1  ;;  %v1604_v60 = vmul.f32 %v2459_v52, %v3469_v7  ;;  %v1848_v55 = vmul.f32 %v3106_v19, %v3469_v7 }
  0xf3   : > { %v1555_v58 = vadd.f32 %v1523_v51, %v1487_v6  ;;  %v1722_v53 = vsel %vm551_vm2, %v1720_v56, %v1721_v63  ;;  %v611_v13 = vsel %vm551_vm2, %v608_v41, %v610_v8  ;;  %v968_v1 = vmul.f32 %v2451_v47, %v3347_v4 }
  0xf4   : > { %v1966_v17 = vsel %vm796_vm3, %v1964_v10, %v1965_v18  ;;  %v687_v28 = vadd.f32 %v611_v13, %v410_v48  ;;  %v1411_v16 = vrot.slane %v1292_v20, 2  ;;  %v1524_v35 = vmul.f32 %v2487_v9, %v3439_v12 }
  0xf5   : > { %v1799_v57 = vadd.f32 %v1722_v53, %v1555_v58  ;;  %v856_v36 = vsel %vm796_vm3, %v853_v21, %v855_v0  ;;  %v1168_v5 = vsel %vm551_vm2, %v1165_v23, %v1167_v11  ;;  %v491_v42 = vmul.f32 %v2417_v32, %v3340_v34 }
  0xf6   : > { %v932_v41 = vadd.f32 %v856_v36, %v687_v28  ;;  %v1723_v37 = vrot.slane %v1604_v60, 1  ;;  %v1967_v27 = vrot.slane %v1848_v55, 2  ;;  %v492_v54 = vmul.f32 %v2417_v32, %v3347_v4 }
  0xf7   : > { %v2043_v26 = vadd.f32 %v1966_v17, %v1799_v57  ;;  %v612_v14 = vrot.slane %v491_v42, 1  ;;  %v736_v22 = vmul.f32 %v2420_v33, %v3340_v34  ;;  %v3505_v25 = vmul.f32 %v2420_v33, %v3347_v4  ;;  %v3555_v42 = vld [vmem:[#allocation2 + $0x160] sm:$0x3] }
  0xf8   : > { %v1000_v21 = vadd.f32 %v968_v1, %v932_v41  ;;  %v1412_v23 = vsel %vm796_vm3, %v1409_v45, %v1411_v16  ;;  %v613_v49 = vrot.slane %v492_v54, 1  ;;  %v1049_v50 = vmul.f32 %v2433_v39, %v3432_v31 }
  0xf9   : > { %2075 = vst.msk [vmem:[%s2558_s23 + $0xb0] sm:$0xff] %vm206_vm0, %v2043_v26  ;;  %v411_v40 = vmul.f32 %v2430_v38, %v3340_v34  ;;  %v857_v2 = vrot.slane %v736_v22, 2  ;;  %v858_v51 = vrot.slane %v3505_v25, 2  ;;  %v1050_v44 = vmul.f32 %v2433_v39, %v3439_v12 }
  0xfa   : > { %v1244_v3 = vadd.f32 %v1168_v5, %v1000_v21  ;;  %v614_v45 = vsel %vm551_vm2, %v612_v14, %v613_v49  ;;  %v1293_v56 = vmul.f32 %v2442_v43, %v3432_v31  ;;  %v3526_v61 = vmul.f32 %v2442_v43, %v3439_v12 }
  0xfb   : > { %v1724_v34 = vsel %vm551_vm2, %v1721_v63, %v1723_v37  ;;  %v688_v15 = vadd.f32 %v614_v45, %v411_v40  ;;  %v1169_v29 = vrot.slane %v1049_v50, 1  ;;  %v1170_v62 = vrot.slane %v1050_v44, 1 }
  0xfc   : > { %v1488_v10 = vadd.f32 %v1412_v23, %v1244_v3  ;;  %v1968_v24 = vsel %vm796_vm3, %v1965_v18, %v1967_v27  ;;  %v859_v6 = vsel %vm796_vm3, %v857_v2, %v858_v51  ;;  %v1605_v8 = vmul.f32 %v2459_v52, %v3512_v30 }
  0xfd   : > { %v933_v0 = vadd.f32 %v859_v6, %v688_v15  ;;  %v969_v20 = vmul.f32 %v2451_v47, %v3432_v31  ;;  %v3537_v48 = vmul.f32 %v2459_v52, %v3519_v59  ;;  %v1849_v63 = vmul.f32 %v3106_v19, %v3512_v30 }
  0xfe   : > { %v1556_v11 = vadd.f32 %v1524_v35, %v1488_v10  ;;  %v1413_v60 = vrot.slane %v1293_v56, 2  ;;  %v1414_v18 = vrot.slane %v3526_v61, 2  ;;  %v3544_v55 = vmul.f32 %v3106_v19, %v3519_v59 }
  0xff   : > { %v1001_v58 = vadd.f32 %v969_v20, %v933_v0  ;;  %v1171_v53 = vsel %vm551_vm2, %v1169_v29, %v1170_v62  ;;  %v1525_v13 = vmul.f32 %v2487_v9, %v3512_v30  ;;  %v1725_v1 = vrot.slane %v1605_v8, 1 }
 0x100   : > { %v1800_v17 = vadd.f32 %v1724_v34, %v1556_v11  ;;  %v1726_v28 = vrot.slane %v3537_v48, 1  ;;  %v493_v16 = vmul.f32 %v2417_v32, %v3383_v46  ;;  %v738_v35 = vmul.f32 %v2420_v33, %v3383_v46 }
 0x101   : > { %v1245_v57 = vadd.f32 %v1171_v53, %v1001_v58  ;;  %v1969_v36 = vrot.slane %v1849_v63, 2  ;;  %v1970_v5 = vrot.slane %v3544_v55, 2  ;;  %v1051_v41 = vmul.f32 %v2433_v39, %v3469_v7 }
 0x102   : > { %v2044_v37 = vadd.f32 %v1968_v24, %v1800_v17  ;;  %v1415_v27 = vsel %vm796_vm3, %v1413_v60, %v1414_v18  ;;  %v615_v54 = vrot.slane %v493_v16, 1  ;;  %v860_v26 = vrot.slane %v738_v35, 2 }
 0x103   : > { %v1489_v14 = vadd.f32 %v1415_v27, %v1245_v57  ;;  %v412_v22 = vmul.f32 %v2430_v38, %v3347_v4  ;;  %v1172_v25 = vrot.slane %v1051_v41, 1  ;;  %v1295_v46 = vmul.f32 %v2442_v43, %v3469_v7  ;;  %v3611_v57 = vld [vmem:[#allocation2 + $0x170] sm:$0xff] }
 0x104   : > { %2076 = vst.msk [vmem:[%s2558_s23 + $0xb8] sm:$0xff] %vm206_vm0, %v2044_v37  ;;  %v1727_v21 = vsel %vm551_vm2, %v1725_v1, %v1726_v28  ;;  %v616_v23 = vsel %vm551_vm2, %v613_v49, %v615_v54  ;;  %v1607_v50 = vmul.f32 %v2459_v52, %v3555_v42  ;;  %v1851_v40 = vmul.f32 %v3106_v19, %v3555_v42  ;;  %v3604_v1 = vld [vmem:[#allocation2 + $0x168] sm:$0xff] }
 0x105   : > { %v1557_v2 = vadd.f32 %v1525_v13, %v1489_v14  ;;  %v1971_v4 = vsel %vm796_vm3, %v1969_v36, %v1970_v5  ;;  %v689_v44 = vadd.f32 %v616_v23, %v412_v22  ;;  %v970_v3 = vmul.f32 %v2451_v47, %v3439_v12 }
 0x106   : > { %v861_v45 = vsel %vm796_vm3, %v858_v51, %v860_v26  ;;  %v1173_v56 = vsel %vm551_vm2, %v1170_v62, %v1172_v25  ;;  %v1526_v49 = vmul.f32 %v2487_v9, %v3519_v59  ;;  %v494_v61 = vmul.f32 %v2417_v32, %v3432_v31 }
 0x107   : > { %v1801_v34 = vadd.f32 %v1727_v21, %v1557_v2  ;;  %v934_v15 = vadd.f32 %v861_v45, %v689_v44  ;;  %v1416_v29 = vrot.slane %v1295_v46, 2  ;;  %v3587_v10 = vmul.f32 %v2417_v32, %v3439_v12 }
 0x108   : > { %v1728_v24 = vrot.slane %v1607_v50, 1  ;;  %v1972_v6 = vrot.slane %v1851_v40, 2  ;;  %v617_v8 = vrot.slane %v494_v61, 1  ;;  %v739_v51 = vmul.f32 %v2420_v33, %v3432_v31 }
 0x109   : > { %v2045_v62 = vadd.f32 %v1971_v4, %v1801_v34  ;;  %v1002_v0 = vadd.f32 %v970_v3, %v934_v15  ;;  %v618_v20 = vrot.slane %v3587_v10, 1  ;;  %v3594_v63 = vmul.f32 %v2420_v33, %v3439_v12  ;;  %v3641_v15 = vld [vmem:[#allocation2 + $0x178] sm:$0x3] }
 0x10a   : > { %v413_v11 = vmul.f32 %v2430_v38, %v3432_v31  ;;  %v862_v60 = vrot.slane %v739_v51, 2  ;;  %v1052_v58 = vmul.f32 %v2433_v39, %v3512_v30  ;;  %v1053_v53 = vmul.f32 %v2433_v39, %v3519_v59 }
 0x10b   : > { %2077 = vst.msk [vmem:[%s2558_s23 + $0xc0] sm:$0xff] %vm206_vm0, %v2045_v62  ;;  %v1246_v13 = vadd.f32 %v1173_v56, %v1002_v0  ;;  %v619_v17 = vsel %vm551_vm2, %v617_v8, %v618_v20  ;;  %v863_v16 = vrot.slane %v3594_v63, 2  ;;  %v1296_v35 = vmul.f32 %v2442_v43, %v3512_v30 }
 0x10c   : > { %v1417_v31 = vsel %vm796_vm3, %v1414_v18, %v1416_v29  ;;  %v690_v36 = vadd.f32 %v619_v17, %v413_v11  ;;  %v1174_v41 = vrot.slane %v1052_v58, 1  ;;  %v1297_v37 = vmul.f32 %v2442_v43, %v3519_v59 }
 0x10d   : > { %v1490_v27 = vadd.f32 %v1417_v31, %v1246_v13  ;;  %v864_v54 = vsel %vm796_vm3, %v862_v60, %v863_v16  ;;  %v1175_v26 = vrot.slane %v1053_v53, 1  ;;  %v1418_v14 = vrot.slane %v1296_v35, 2 }
 0x10e   : > { %v935_v22 = vadd.f32 %v864_v54, %v690_v36  ;;  %v971_v25 = vmul.f32 %v2451_v47, %v3512_v30  ;;  %v1419_v46 = vrot.slane %v1297_v37, 2  ;;  %v1608_v18 = vmul.f32 %v2459_v52, %v3604_v1 }
 0x10f   : > { %v1558_v21 = vadd.f32 %v1526_v49, %v1490_v27  ;;  %v3622_v23 = vmul.f32 %v2459_v52, %v3611_v57  ;;  %v1852_v50 = vmul.f32 %v3106_v19, %v3604_v1  ;;  %v3628_v40 = vmul.f32 %v3106_v19, %v3611_v57 }
 0x110   : > { %v1729_v2 = vsel %vm551_vm2, %v1726_v28, %v1728_v24  ;;  %v1973_v4 = vsel %vm796_vm3, %v1970_v5, %v1972_v6  ;;  %v1003_v44 = vadd.f32 %v971_v25, %v935_v22  ;;  %v1527_v3 = vmul.f32 %v2487_v9, %v3604_v1 }
 0x111   : > { %v1802_v45 = vadd.f32 %v1729_v2, %v1558_v21  ;;  %v1176_v56 = vsel %vm551_vm2, %v1174_v41, %v1175_v26  ;;  %v1420_v49 = vsel %vm796_vm3, %v1418_v14, %v1419_v46  ;;  %v1730_v61 = vrot.slane %v1608_v18, 1 }
 0x112   : > { %v1247_v34 = vadd.f32 %v1176_v56, %v1003_v44  ;;  %v1731_v48 = vrot.slane %v3622_v23, 1  ;;  %v496_v55 = vmul.f32 %v2417_v32, %v3469_v7  ;;  %v741_v28 = vmul.f32 %v2420_v33, %v3469_v7 }
 0x113   : > { %v2046_v5 = vadd.f32 %v1973_v4, %v1802_v45  ;;  %v1974_v29 = vrot.slane %v1852_v50, 2  ;;  %v1975_v10 = vrot.slane %v3628_v40, 2  ;;  %v1054_v24 = vmul.f32 %v2433_v39, %v3555_v42  ;;  %v3684_v40 = vld [vmem:[#allocation2 + $0x180] sm:$0xff] }
 0x114   : > { %v1491_v6 = vadd.f32 %v1420_v49, %v1247_v34  ;;  %v620_v8 = vrot.slane %v496_v55, 1  ;;  %v865_v51 = vrot.slane %v741_v28, 2  ;;  %v1298_v62 = vmul.f32 %v2442_v43, %v3555_v42 }
 0x115   : > { %2078 = vst.msk [vmem:[%s2558_s23 + $0xc8] sm:$0xff] %vm206_vm0, %v2046_v5  ;;  %v414_v0 = vmul.f32 %v2430_v38, %v3439_v12  ;;  %v1177_v63 = vrot.slane %v1054_v24, 1  ;;  %v1610_v7 = vmul.f32 %v2459_v52, %v3641_v15  ;;  %v1854_v11 = vmul.f32 %v3106_v19, %v3641_v15 }
 0x116   : > { %v1559_v60 = vadd.f32 %v1527_v3, %v1491_v6  ;;  %v1732_v58 = vsel %vm551_vm2, %v1730_v61, %v1731_v48  ;;  %v621_v53 = vsel %vm551_vm2, %v618_v20, %v620_v8  ;;  %v972_v13 = vmul.f32 %v2451_v47, %v3519_v59 }
 0x117   : > { %v1976_v17 = vsel %vm796_vm3, %v1974_v29, %v1975_v10  ;;  %v691_v35 = vadd.f32 %v621_v53, %v414_v0  ;;  %v1421_v31 = vrot.slane %v1298_v62, 2  ;;  %v1528_v12 = vmul.f32 %v2487_v9, %v3611_v57 }
 0x118   : > { %v1803_v36 = vadd.f32 %v1732_v58, %v1559_v60  ;;  %v866_v41 = vsel %vm796_vm3, %v863_v16, %v865_v51  ;;  %v1178_v19 = vsel %vm551_vm2, %v1175_v26, %v1177_v63  ;;  %v497_v37 = vmul.f32 %v2417_v32, %v3512_v30 }
 0x119   : > { %v936_v20 = vadd.f32 %v866_v41, %v691_v35  ;;  %v1733_v27 = vrot.slane %v1610_v7, 1  ;;  %v1977_v54 = vrot.slane %v1854_v11, 2  ;;  %v498_v14 = vmul.f32 %v2417_v32, %v3519_v59 }
 0x11a   : > { %v2047_v22 = vadd.f32 %v1976_v17, %v1803_v36  ;;  %v622_v25 = vrot.slane %v497_v37, 1  ;;  %v742_v18 = vmul.f32 %v2420_v33, %v3512_v30  ;;  %v3677_v21 = vmul.f32 %v2420_v33, %v3519_v59  ;;  %v3730_v37 = vld [vmem:[#allocation2 + $0x190] sm:$0x3] }
 0x11b   : > { %v1004_v16 = vadd.f32 %v972_v13, %v936_v20  ;;  %v1422_v26 = vsel %vm796_vm3, %v1419_v46, %v1421_v31  ;;  %v623_v23 = vrot.slane %v498_v14, 1  ;;  %v1055_v50 = vmul.f32 %v2433_v39, %v3604_v1  ;;  %v3691_v46 = vld [vmem:[#allocation2 + $0x188] sm:$0xff] }
 0x11c   : > { %2079 = vst.msk [vmem:[%s2558_s23 + $0xd0] sm:$0xff] %vm206_vm0, %v2047_v22  ;;  %v415_v2 = vmul.f32 %v2430_v38, %v3512_v30  ;;  %v867_v4 = vrot.slane %v742_v18, 2  ;;  %v868_v44 = vrot.slane %v3677_v21, 2  ;;  %v1056_v3 = vmul.f32 %v2433_v39, %v3611_v57 }
 0x11d   : > { %v1248_v45 = vadd.f32 %v1178_v19, %v1004_v16  ;;  %v624_v56 = vsel %vm551_vm2, %v622_v25, %v623_v23  ;;  %v1299_v49 = vmul.f32 %v2442_v43, %v3604_v1  ;;  %v3698_v61 = vmul.f32 %v2442_v43, %v3611_v57 }
 0x11e   : > { %v1734_v30 = vsel %vm551_vm2, %v1731_v48, %v1733_v27  ;;  %v692_v34 = vadd.f32 %v624_v56, %v415_v2  ;;  %v1179_v55 = vrot.slane %v1055_v50, 1  ;;  %v1180_v28 = vrot.slane %v1056_v3, 1  ;;  %v3712_v48 = vld [vmem:[%s2362_s20 + $0x8] ss:$0 sm:$0xff] }
 0x11f   : > { %v1492_v5 = vadd.f32 %v1422_v26, %v1248_v45  ;;  %v1978_v29 = vsel %vm796_vm3, %v1975_v10, %v1977_v54  ;;  %v869_v24 = vsel %vm796_vm3, %v867_v4, %v868_v44  ;;  %v1611_v6 = vmul.f32 %v2459_v52, %v3684_v40 }
 0x120   : > { %v937_v8 = vadd.f32 %v869_v24, %v692_v34  ;;  %v973_v51 = vmul.f32 %v2451_v47, %v3604_v1  ;;  %v3709_v62 = vmul.f32 %v2459_v52, %v3691_v46  ;;  %v1855_v0 = vmul.f32 %v3712_v48, %v3684_v40 }
 0x121   : > { %v1560_v63 = vadd.f32 %v1528_v12, %v1492_v5  ;;  %v1423_v10 = vrot.slane %v1299_v49, 2  ;;  %v1424_v7 = vrot.slane %v3698_v61, 2  ;;  %v3719_v11 = vmul.f32 %v3712_v48, %v3691_v46 }
 0x122   : > { %v1005_v60 = vadd.f32 %v973_v51, %v937_v8  ;;  %v1181_v58 = vsel %vm551_vm2, %v1179_v55, %v1180_v28  ;;  %v1529_v53 = vmul.f32 %v2487_v9, %v3684_v40  ;;  %v1735_v13 = vrot.slane %v1611_v6, 1 }
 0x123   : > { %v1804_v17 = vadd.f32 %v1734_v30, %v1560_v63  ;;  %v1736_v35 = vrot.slane %v3709_v62, 1  ;;  %v499_v31 = vmul.f32 %v2417_v32, %v3555_v42  ;;  %v744_v12 = vmul.f32 %v2420_v33, %v3555_v42 }
 0x124   : > { %v1249_v36 = vadd.f32 %v1181_v58, %v1005_v60  ;;  %v1979_v41 = vrot.slane %v1855_v0, 2  ;;  %v1980_v19 = vrot.slane %v3719_v11, 2  ;;  %v1057_v20 = vmul.f32 %v2433_v39, %v3641_v15 }
 0x125   : > { %v2048_v27 = vadd.f32 %v1978_v29, %v1804_v17  ;;  %v1425_v54 = vsel %vm796_vm3, %v1423_v10, %v1424_v7  ;;  %v625_v14 = vrot.slane %v499_v31, 1  ;;  %v870_v22 = vrot.slane %v744_v12, 2  ;;  %v379_v12 = vld [vmem:[#allocation2 + $0x1a0] sm:$0xff] }
 0x126   : > { %v1493_v25 = vadd.f32 %v1425_v54, %v1249_v36  ;;  %v416_v18 = vmul.f32 %v2430_v38, %v3519_v59  ;;  %v1182_v21 = vrot.slane %v1057_v20, 1  ;;  %v1301_v42 = vmul.f32 %v2442_v43, %v3641_v15 }
 0x127   : > { %2080 = vst.msk [vmem:[%s2558_s23 + $0xd8] sm:$0xff] %vm206_vm0, %v2048_v27  ;;  %v1737_v16 = vsel %vm551_vm2, %v1735_v13, %v1736_v35  ;;  %v626_v26 = vsel %vm551_vm2, %v623_v23, %v625_v14  ;;  %v1613_v50 = vmul.f32 %v2459_v52, %v3730_v37  ;;  %v1857_v2 = vmul.f32 %v3712_v48, %v3730_v37  ;;  %v378_v13 = vld [vmem:[#allocation2 + $0x198] sm:$0xff] }
 0x128   : > { %v1561_v4 = vadd.f32 %v1529_v53, %v1493_v25  ;;  %v1981_v59 = vsel %vm796_vm3, %v1979_v41, %v1980_v19  ;;  %v693_v3 = vadd.f32 %v626_v26, %v416_v18  ;;  %v974_v45 = vmul.f32 %v2451_v47, %v3611_v57 }
 0x129   : > { %v871_v56 = vsel %vm796_vm3, %v868_v44, %v870_v22  ;;  %v1183_v49 = vsel %vm551_vm2, %v1180_v28, %v1182_v21  ;;  %v1426_v23 = vrot.slane %v1301_v42, 2  ;;  %v500_v61 = vmul.f32 %v2417_v32, %v3604_v1 }
 0x12a   : > { %v1805_v30 = vadd.f32 %v1737_v16, %v1561_v4  ;;  %v938_v34 = vadd.f32 %v871_v56, %v693_v3  ;;  %v1738_v55 = vrot.slane %v1613_v50, 1  ;;  %v501_v5 = vmul.f32 %v2417_v32, %v3611_v57 }
 0x12b   : > { %v1982_v29 = vrot.slane %v1857_v2, 2  ;;  %v417_v24 = vmul.f32 %v2430_v38, %v3604_v1  ;;  %v627_v6 = vrot.slane %v500_v61, 1  ;;  %v745_v44 = vmul.f32 %v2420_v33, %v3604_v1 }
 0x12c   : > { %v2049_v28 = vadd.f32 %v1981_v59, %v1805_v30  ;;  %v1006_v8 = vadd.f32 %v974_v45, %v938_v34  ;;  %v628_v51 = vrot.slane %v501_v5, 1  ;;  %v746_v0 = vmul.f32 %v2420_v33, %v3611_v57 }
 0x12d   : > { %v1427_v63 = vsel %vm796_vm3, %v1424_v7, %v1426_v23  ;;  %v872_v10 = vrot.slane %v745_v44, 2  ;;  %v1058_v60 = vmul.f32 %v2433_v39, %v3684_v40  ;;  %v1059_v58 = vmul.f32 %v2433_v39, %v3691_v46  ;;  %v380_v44 = vld [vmem:[#allocation2 + $0x1a8] sm:$0x3] }
 0x12e   : > { %2081 = vst.msk [vmem:[%s2558_s23 + $0xe0] sm:$0xff] %vm206_vm0, %v2049_v28  ;;  %v1250_v53 = vadd.f32 %v1183_v49, %v1006_v8  ;;  %v629_v1 = vsel %vm551_vm2, %v627_v6, %v628_v51  ;;  %v873_v17 = vrot.slane %v746_v0, 2  ;;  %v1302_v31 = vmul.f32 %v2442_v43, %v3684_v40 }
 0x12f   : > { %v694_v36 = vadd.f32 %v629_v1, %v417_v24  ;;  %v1184_v7 = vrot.slane %v1058_v60, 1  ;;  %v1185_v41 = vrot.slane %v1059_v58, 1  ;;  %v1303_v20 = vmul.f32 %v2442_v43, %v3691_v46 }
 0x130   : > { %v1494_v27 = vadd.f32 %v1427_v63, %v1250_v53  ;;  %v1530_v54 = vmul.f32 %v2487_v9, %v3691_v46  ;;  %v874_v14 = vsel %vm796_vm3, %v872_v10, %v873_v17  ;;  %v975_v25 = vmul.f32 %v2451_v47, %v3684_v40 }
 0x131   : > { %v939_v22 = vadd.f32 %v874_v14, %v694_v36  ;;  %v1428_v18 = vrot.slane %v1302_v31, 2  ;;  %v1614_v21 = vmul.f32 %v2459_v52, %v378_v13  ;;  %v1186_v16 = vsel %vm551_vm2, %v1184_v7, %v1185_v41 }
 0x132   : > { %v1562_v42 = vadd.f32 %v1530_v54, %v1494_v27  ;;  %v1429_v26 = vrot.slane %v1303_v20, 2  ;;  %v1615_v50 = vmul.f32 %v2459_v52, %v379_v12  ;;  %v1739_v2 = vsel %vm551_vm2, %v1736_v35, %v1738_v55 }
 0x133   : > { %v1983_v4 = vsel %vm796_vm3, %v1980_v19, %v1982_v29  ;;  %v1007_v59 = vadd.f32 %v975_v25, %v939_v22  ;;  %v1858_v40 = vmul.f32 %v3712_v48, %v378_v13  ;;  %v1740_v45 = vrot.slane %v1614_v21, 1 }
 0x134   : > { %v1806_v3 = vadd.f32 %v1739_v2, %v1562_v42  ;;  %v1741_v56 = vrot.slane %v1615_v50, 1  ;;  %v1859_v49 = vmul.f32 %v3712_v48, %v379_v12  ;;  %v1531_v61 = vmul.f32 %v2487_v9, %v378_v13 }
 0x135   : > { %v1251_v23 = vadd.f32 %v1186_v16, %v1007_v59  ;;  %v502_v62 = vmul.f32 %v2417_v32, %v3641_v15  ;;  %v747_v11 = vmul.f32 %v2420_v33, %v3641_v15  ;;  %v1430_v19 = vsel %vm796_vm3, %v1428_v18, %v1429_v26 }
 0x136   : > { %v2050_v35 = vadd.f32 %v1983_v4, %v1806_v3  ;;  %v1060_v30 = vmul.f32 %v2433_v39, %v3730_v37  ;;  %v1742_v29 = vsel %vm551_vm2, %v1740_v45, %v1741_v56  ;;  %v1984_v24 = vrot.slane %v1858_v40, 2 }
 0x137   : > { %v1495_v34 = vadd.f32 %v1430_v19, %v1251_v23  ;;  %v630_v55 = vrot.slane %v502_v62, 1  ;;  %v875_v5 = vrot.slane %v747_v11, 2  ;;  %v1985_v6 = vrot.slane %v1859_v49, 2 }
 0x138   : > { %2082 = vst.msk [vmem:[%s2558_s23 + $0xe8] sm:$0xff] %vm206_vm0, %v2050_v35  ;;  %v418_v32 = vmul.f32 %v2430_v38, %v3611_v57  ;;  %v1187_v28 = vrot.slane %v1060_v30, 1  ;;  %v1304_v39 = vmul.f32 %v2442_v43, %v3730_v37  ;;  %v976_v0 = vmul.f32 %v2451_v47, %v3691_v46 }
 0x139   : > { %v1563_v33 = vadd.f32 %v1531_v61, %v1495_v34  ;;  %v631_v15 = vsel %vm551_vm2, %v628_v51, %v630_v55  ;;  %v876_v10 = vsel %vm796_vm3, %v873_v17, %v875_v5  ;;  %v1616_v60 = vmul.f32 %v2459_v52, %v380_v44 }
 0x13a   : > { %v695_v8 = vadd.f32 %v631_v15, %v418_v32  ;;  %v1986_v58 = vsel %vm796_vm3, %v1984_v24, %v1985_v6  ;;  %v1188_v53 = vsel %vm551_vm2, %v1185_v41, %v1187_v28  ;;  %v1431_v51 = vrot.slane %v1304_v39, 2 }
 0x13b   : > { %v1807_v63 = vadd.f32 %v1742_v29, %v1563_v33  ;;  %v1743_v43 = vrot.slane %v1616_v60, 1  ;;  %v1860_v37 = vmul.f32 %v3712_v48, %v380_v44  ;;  %v1532_v46 = vmul.f32 %v2487_v9, %v379_v12 }
 0x13c   : > { %v940_v38 = vadd.f32 %v876_v10, %v695_v8  ;;  %v1432_v1 = vsel %vm796_vm3, %v1429_v26, %v1431_v51 }
 0x13d   : > { %v2051_v57 = vadd.f32 %v1986_v58, %v1807_v63  ;;  %v1744_v17 = vsel %vm551_vm2, %v1741_v56, %v1743_v43  ;;  %v1987_v31 = vrot.slane %v1860_v37, 2 }
 0x13e   : > { %v1008_v13 = vadd.f32 %v976_v0, %v940_v38 }
 0x13f   : > { %2083 = vst.msk [vmem:[%s2558_s23 + $0xf0] sm:$0xff] %vm206_vm0, %v2051_v57  ;;  %v1988_v41 = vsel %vm796_vm3, %v1985_v6, %v1987_v31 }
 0x140   : > { %v1252_v47 = vadd.f32 %v1188_v53, %v1008_v13 }
 0x142   : > { %v1496_v52 = vadd.f32 %v1432_v1, %v1252_v47 }
 0x144   : > { %v1564_v36 = vadd.f32 %v1532_v46, %v1496_v52 }
 0x146   : > { %v1808_v7 = vadd.f32 %v1744_v17, %v1564_v36 }
 0x148   : > { %v2052_v20 = vadd.f32 %v1988_v41, %v1808_v7 }
 0x14a   : > { %2084 = vst.msk [vmem:[%s2558_s23 + $0xf8] sm:$0xff] %vm206_vm0, %v2052_v20 }
 0x14b PF: > { %s12_s11 = sadd.s32 1, %s2252_s11   ;;  %s3837_s9 = smov %s2248_s10 }
 0x14c   : > { %p9_p5 = scmp.ge.s32.totalorder %s12_s11, 4   ;;  %s3838_s10 = smov %s3840_s12 }
 0x14e   :  { %11 = sbr.rel (!%p9_p5) target bundleno = 2 (0x2), region = 62 }

</bundles_post_ra>
